<compile_context>
chip_gen: v7x
topology: tpu7x:2x2x1
jax: 0.10.0
libtpu: 0.0.40
codegen_flags: <defaults>
</compile_context>

<pallas_src>
import jax
import jax.numpy as jnp
from jax.experimental import pallas as pl
from jax.experimental.pallas import tpu as pltpu


# --------------------------- fused forward kernel ----------------------------

def _make_lstm_reg_kernel(num_layers, T, B, H):
    """Builds the fused kernel. Refs: x2d, (wih_t, whh_t, bias)*L, wreg_t, breg, out."""

    def kernel(*refs):
        x_ref = refs[0]
        layer_refs = refs[1:1 + 3 * num_layers]
        wreg_ref = refs[1 + 3 * num_layers]
        breg_ref = refs[2 + 3 * num_layers]
        out_ref = refs[3 + 3 * num_layers]

        def cell(gx_t, h_prev, c_prev, whh):
            # gx_t already contains x_t @ W_ih^T + b_ih + b_hh (hoisted projection).
            gates = gx_t + jnp.dot(h_prev, whh, preferred_element_type=jnp.float32)
            i_g = jax.nn.sigmoid(gates[:, 0 * H:1 * H])
            f_g = jax.nn.sigmoid(gates[:, 1 * H:2 * H])
            g_g = jnp.tanh(gates[:, 2 * H:3 * H])
            o_g = jax.nn.sigmoid(gates[:, 3 * H:4 * H])
            c_new = f_g * c_prev + i_g * g_g
            h_new = o_g * jnp.tanh(c_new)
            return h_new, c_new

        # seq: (T*B, D_in) activations of the current layer; stays in vregs/VMEM.
        seq = x_ref[...].astype(jnp.float32)

        for layer in range(num_layers):
            wih_ref, whh_ref, b_ref = layer_refs[3 * layer:3 * layer + 3]

            # Hoisted input projection for the whole sequence: one MXU op per layer.
            gx = (jnp.dot(seq, wih_ref[...], preferred_element_type=jnp.float32)
                  + b_ref[...])                                   # (T*B, 4H)

            whh = whh_ref[...]                                    # resident (H, 4H)
            h = jnp.zeros((B, H), jnp.float32)
            c = jnp.zeros((B, H), jnp.float32)
            hs = []
            for t in range(T):   # serial recurrence; T is small -> static unroll
                h, c = cell(gx[t * B:(t + 1) * B, :], h, c, whh)
                hs.append(h)
            seq = jnp.concatenate(hs, axis=0)                     # (T*B, H), on-chip

        # Final Linear over all timesteps in one matmul; single store to the output.
        out_ref[...] = (jnp.dot(seq, wreg_ref[...],
                                preferred_element_type=jnp.float32)
                        + breg_ref[...]).astype(out_ref.dtype)

    return kernel


def _cost_estimate(num_layers, T, B, D, H, O):
    """Advisory cost hint for the XLA scheduler around the custom call."""
    flops = 0
    d_in = D
    for _ in range(num_layers):
        flops += 2 * (T * B) * d_in * (4 * H)       # hoisted input projection
        flops += 2 * T * B * H * (4 * H)            # recurrent matmuls
        flops += 10 * T * B * H                     # gate elementwise math
        d_in = H
    flops += 2 * (T * B) * H * O                    # final Linear
    transcendentals = num_layers * T * B * 6 * H    # 4 sigmoid + 2 tanh per cell
    bytes_accessed = 4 * (T * B * D + T * B * O
                          + num_layers * (D * 4 * H + H * 4 * H + 4 * H)
                          + H * O + O)
    return pl.CostEstimate(flops=flops, transcendentals=transcendentals,
                           bytes_accessed=bytes_accessed)


def lstm_reg_forward(x, params):
    """x: (T, B, input_size) -> (T, B, output_size). Single fused pallas_call."""
    T, B, D = x.shape
    num_layers = len(params["lstm"])
    H = params["lstm"][0][1].shape[0]          # whh_t: (H, 4H)
    O = params["reg_w_t"].shape[1]             # (H, O)

    args = [x.reshape(T * B, D)]               # free reshape (contiguous)
    for (wih_t, whh_t, bias) in params["lstm"]:
        args += [wih_t, whh_t, bias]
    args += [params["reg_w_t"], params["reg_b"]]

    kernel = _make_lstm_reg_kernel(num_layers, T, B, H)
    vmem_spec = lambda: pl.BlockSpec(memory_space=pltpu.MemorySpace.VMEM)

    out = pl.pallas_call(
        kernel,
        out_shape=jax.ShapeDtypeStruct((T * B, O), x.dtype),
        in_specs=[vmem_spec() for _ in args],
        out_specs=vmem_spec(),
        cost_estimate=_cost_estimate(num_layers, T, B, D, H, O),
    )(*args)
    return out.reshape(T, B, O)


# --------------------------------- params -------------------------------------

def init_params(key, input_size, hidden_size, output_size, num_layers):
    """PyTorch-style U(-1/sqrt(H), 1/sqrt(H)) init. Weights stored pre-transposed,
    biases pre-folded (b_ih + b_hh) so the forward does zero per-call prep work."""
    k = 1.0 / (float(hidden_size) ** 0.5)
    params = {"lstm": []}
    for layer in range(num_layers):
        d_in = input_size if layer == 0 else hidden_size
        key, k1, k2, k3, k4 = jax.random.split(key, 5)
        w_ih = jax.random.uniform(k1, (4 * hidden_size, d_in), jnp.float32, -k, k)
        w_hh = jax.random.uniform(k2, (4 * hidden_size, hidden_size), jnp.float32, -k, k)
        b_ih = jax.random.uniform(k3, (4 * hidden_size,), jnp.float32, -k, k)
        b_hh = jax.random.uniform(k4, (4 * hidden_size,), jnp.float32, -k, k)
        params["lstm"].append((
            jnp.transpose(w_ih),                          # (D_in, 4H)
            jnp.transpose(w_hh),                          # (H, 4H)
            (b_ih + b_hh).reshape(1, 4 * hidden_size),    # (1, 4H)
        ))
    key, k1, k2 = jax.random.split(key, 3)
    reg_w = jax.random.uniform(k1, (output_size, hidden_size), jnp.float32, -k, k)
    reg_b = jax.random.uniform(k2, (output_size,), jnp.float32, -k, k)
    params["reg_w_t"] = jnp.transpose(reg_w)              # (H, O)
    params["reg_b"] = reg_b.reshape(1, output_size)       # (1, O)
    return params


# ---------------------------------- main ---------------------------------------

if __name__ == "__main__":
    # Small shapes consistent with the module's forward (seq-first LSTM input).
    INPUT_SIZE, HIDDEN_SIZE, OUTPUT_SIZE, NUM_LAYERS = 16, 32, 1, 2
    T, B = 8, 2

    key = jax.random.PRNGKey(0)
    key, xk = jax.random.split(key)
    x = jax.random.normal(xk, (T, B, INPUT_SIZE), jnp.float32)

    params = init_params(key, INPUT_SIZE, HIDDEN_SIZE, OUTPUT_SIZE, NUM_LAYERS)

    out = lstm_reg_forward(x, params)
    out = jax.block_until_ready(out)
    assert out.shape == (T, B, OUTPUT_SIZE), out.shape
    assert bool(jnp.all(jnp.isfinite(out)))
    print("KERNEL_OK")
</pallas_src>

<mosaic_0001>
module attributes {stable_mosaic.version = 11 : i64} {
  func.func @kernel(%arg0: memref<16x16xf32, #tpu.memory_space<vmem>>, %arg1: memref<16x128xf32, #tpu.memory_space<vmem>>, %arg2: memref<32x128xf32, #tpu.memory_space<vmem>>, %arg3: memref<1x128xf32, #tpu.memory_space<vmem>>, %arg4: memref<32x128xf32, #tpu.memory_space<vmem>>, %arg5: memref<32x128xf32, #tpu.memory_space<vmem>>, %arg6: memref<1x128xf32, #tpu.memory_space<vmem>>, %arg7: memref<32x1xf32, #tpu.memory_space<vmem>>, %arg8: memref<1x1xf32, #tpu.memory_space<vmem>>, %arg9: memref<16x1xf32, #tpu.memory_space<vmem>>) attributes {dimension_semantics = [], scalar_prefetch = 0 : i64, scratch_operands = 0 : i64, tpu.core_type = #tpu.core_type<tc>} {
    %c0 = arith.constant 0 : index
    %c0_0 = arith.constant 0 : index
    %0 = vector.load %arg0[%c0, %c0_0] : memref<16x16xf32, #tpu.memory_space<vmem>>, vector<16x16xf32>
    %c0_1 = arith.constant 0 : index
    %c0_2 = arith.constant 0 : index
    %1 = vector.load %arg1[%c0_1, %c0_2] : memref<16x128xf32, #tpu.memory_space<vmem>>, vector<16x128xf32>
    %cst = arith.constant dense<0.000000e+00> : vector<16x128xf32>
    %2 = tpu.matmul %0, %1, %cst {dimension_numbers = #tpu.dot_dimension_numbers<[1], [0], [0], [1], [0, 0, 1, 1], [], []>} : vector<16x16xf32>, vector<16x128xf32>, vector<16x128xf32> -> vector<16x128xf32>
    %c0_3 = arith.constant 0 : index
    %c0_4 = arith.constant 0 : index
    %3 = vector.load %arg3[%c0_3, %c0_4] : memref<1x128xf32, #tpu.memory_space<vmem>>, vector<1x128xf32>
    %4 = vector.broadcast %3 : vector<1x128xf32> to vector<16x128xf32>
    %5 = arith.addf %2, %4 : vector<16x128xf32>
    %c0_5 = arith.constant 0 : index
    %c0_6 = arith.constant 0 : index
    %6 = vector.load %arg2[%c0_5, %c0_6] : memref<32x128xf32, #tpu.memory_space<vmem>>, vector<32x128xf32>
    %cst_7 = arith.constant 0.000000e+00 : f32
    %7 = vector.broadcast %cst_7 : f32 to vector<2x32xf32>
    %cst_8 = arith.constant 0.000000e+00 : f32
    %8 = vector.broadcast %cst_8 : f32 to vector<2x32xf32>
    %9 = vector.extract_strided_slice %5 {offsets = [0, 0], sizes = [2, 128], strides = [1, 1]} : vector<16x128xf32> to vector<2x128xf32>
    %cst_9 = arith.constant dense<0.000000e+00> : vector<2x128xf32>
    %10 = tpu.matmul %7, %6, %cst_9 {dimension_numbers = #tpu.dot_dimension_numbers<[1], [0], [0], [1], [0, 0, 1, 1], [], []>} : vector<2x32xf32>, vector<32x128xf32>, vector<2x128xf32> -> vector<2x128xf32>
    %11 = arith.addf %9, %10 : vector<2x128xf32>
    %12 = vector.extract_strided_slice %11 {offsets = [0, 0], sizes = [2, 32], strides = [1, 1]} : vector<2x128xf32> to vector<2x32xf32>
    %13 = arith.negf %12 : vector<2x32xf32>
    %14 = math.exp %13 : vector<2x32xf32>
    %cst_10 = arith.constant 1.000000e+00 : f32
    %15 = vector.broadcast %cst_10 : f32 to vector<2x32xf32>
    %16 = arith.addf %15, %14 : vector<2x32xf32>
    %17 = arith.divf %15, %16 : vector<2x32xf32>
    %18 = vector.extract_strided_slice %11 {offsets = [0, 32], sizes = [2, 32], strides = [1, 1]} : vector<2x128xf32> to vector<2x32xf32>
    %19 = arith.negf %18 : vector<2x32xf32>
    %20 = math.exp %19 : vector<2x32xf32>
    %cst_11 = arith.constant 1.000000e+00 : f32
    %21 = vector.broadcast %cst_11 : f32 to vector<2x32xf32>
    %22 = arith.addf %21, %20 : vector<2x32xf32>
    %23 = arith.divf %21, %22 : vector<2x32xf32>
    %24 = vector.extract_strided_slice %11 {offsets = [0, 64], sizes = [2, 32], strides = [1, 1]} : vector<2x128xf32> to vector<2x32xf32>
    %25 = math.tanh %24 : vector<2x32xf32>
    %26 = vector.extract_strided_slice %11 {offsets = [0, 96], sizes = [2, 32], strides = [1, 1]} : vector<2x128xf32> to vector<2x32xf32>
    %27 = arith.negf %26 : vector<2x32xf32>
    %28 = math.exp %27 : vector<2x32xf32>
    %cst_12 = arith.constant 1.000000e+00 : f32
    %29 = vector.broadcast %cst_12 : f32 to vector<2x32xf32>
    %30 = arith.addf %29, %28 : vector<2x32xf32>
    %31 = arith.divf %29, %30 : vector<2x32xf32>
    %32 = arith.mulf %23, %8 : vector<2x32xf32>
    %33 = arith.mulf %17, %25 : vector<2x32xf32>
    %34 = arith.addf %32, %33 : vector<2x32xf32>
    %35 = math.tanh %34 : vector<2x32xf32>
    %36 = arith.mulf %31, %35 : vector<2x32xf32>
    %37 = vector.extract_strided_slice %5 {offsets = [2, 0], sizes = [2, 128], strides = [1, 1]} : vector<16x128xf32> to vector<2x128xf32>
    %cst_13 = arith.constant dense<0.000000e+00> : vector<2x128xf32>
    %38 = tpu.matmul %36, %6, %cst_13 {dimension_numbers = #tpu.dot_dimension_numbers<[1], [0], [0], [1], [0, 0, 1, 1], [], []>} : vector<2x32xf32>, vector<32x128xf32>, vector<2x128xf32> -> vector<2x128xf32>
    %39 = arith.addf %37, %38 : vector<2x128xf32>
    %40 = vector.extract_strided_slice %39 {offsets = [0, 0], sizes = [2, 32], strides = [1, 1]} : vector<2x128xf32> to vector<2x32xf32>
    %41 = arith.negf %40 : vector<2x32xf32>
    %42 = math.exp %41 : vector<2x32xf32>
    %cst_14 = arith.constant 1.000000e+00 : f32
    %43 = vector.broadcast %cst_14 : f32 to vector<2x32xf32>
    %44 = arith.addf %43, %42 : vector<2x32xf32>
    %45 = arith.divf %43, %44 : vector<2x32xf32>
    %46 = vector.extract_strided_slice %39 {offsets = [0, 32], sizes = [2, 32], strides = [1, 1]} : vector<2x128xf32> to vector<2x32xf32>
    %47 = arith.negf %46 : vector<2x32xf32>
    %48 = math.exp %47 : vector<2x32xf32>
    %cst_15 = arith.constant 1.000000e+00 : f32
    %49 = vector.broadcast %cst_15 : f32 to vector<2x32xf32>
    %50 = arith.addf %49, %48 : vector<2x32xf32>
    %51 = arith.divf %49, %50 : vector<2x32xf32>
    %52 = vector.extract_strided_slice %39 {offsets = [0, 64], sizes = [2, 32], strides = [1, 1]} : vector<2x128xf32> to vector<2x32xf32>
    %53 = math.tanh %52 : vector<2x32xf32>
    %54 = vector.extract_strided_slice %39 {offsets = [0, 96], sizes = [2, 32], strides = [1, 1]} : vector<2x128xf32> to vector<2x32xf32>
    %55 = arith.negf %54 : vector<2x32xf32>
    %56 = math.exp %55 : vector<2x32xf32>
    %cst_16 = arith.constant 1.000000e+00 : f32
    %57 = vector.broadcast %cst_16 : f32 to vector<2x32xf32>
    %58 = arith.addf %57, %56 : vector<2x32xf32>
    %59 = arith.divf %57, %58 : vector<2x32xf32>
    %60 = arith.mulf %51, %34 : vector<2x32xf32>
    %61 = arith.mulf %45, %53 : vector<2x32xf32>
    %62 = arith.addf %60, %61 : vector<2x32xf32>
    %63 = math.tanh %62 : vector<2x32xf32>
    %64 = arith.mulf %59, %63 : vector<2x32xf32>
    %65 = vector.extract_strided_slice %5 {offsets = [4, 0], sizes = [2, 128], strides = [1, 1]} : vector<16x128xf32> to vector<2x128xf32>
    %cst_17 = arith.constant dense<0.000000e+00> : vector<2x128xf32>
    %66 = tpu.matmul %64, %6, %cst_17 {dimension_numbers = #tpu.dot_dimension_numbers<[1], [0], [0], [1], [0, 0, 1, 1], [], []>} : vector<2x32xf32>, vector<32x128xf32>, vector<2x128xf32> -> vector<2x128xf32>
    %67 = arith.addf %65, %66 : vector<2x128xf32>
    %68 = vector.extract_strided_slice %67 {offsets = [0, 0], sizes = [2, 32], strides = [1, 1]} : vector<2x128xf32> to vector<2x32xf32>
    %69 = arith.negf %68 : vector<2x32xf32>
    %70 = math.exp %69 : vector<2x32xf32>
    %cst_18 = arith.constant 1.000000e+00 : f32
    %71 = vector.broadcast %cst_18 : f32 to vector<2x32xf32>
    %72 = arith.addf %71, %70 : vector<2x32xf32>
    %73 = arith.divf %71, %72 : vector<2x32xf32>
    %74 = vector.extract_strided_slice %67 {offsets = [0, 32], sizes = [2, 32], strides = [1, 1]} : vector<2x128xf32> to vector<2x32xf32>
    %75 = arith.negf %74 : vector<2x32xf32>
    %76 = math.exp %75 : vector<2x32xf32>
    %cst_19 = arith.constant 1.000000e+00 : f32
    %77 = vector.broadcast %cst_19 : f32 to vector<2x32xf32>
    %78 = arith.addf %77, %76 : vector<2x32xf32>
    %79 = arith.divf %77, %78 : vector<2x32xf32>
    %80 = vector.extract_strided_slice %67 {offsets = [0, 64], sizes = [2, 32], strides = [1, 1]} : vector<2x128xf32> to vector<2x32xf32>
    %81 = math.tanh %80 : vector<2x32xf32>
    %82 = vector.extract_strided_slice %67 {offsets = [0, 96], sizes = [2, 32], strides = [1, 1]} : vector<2x128xf32> to vector<2x32xf32>
    %83 = arith.negf %82 : vector<2x32xf32>
    %84 = math.exp %83 : vector<2x32xf32>
    %cst_20 = arith.constant 1.000000e+00 : f32
    %85 = vector.broadcast %cst_20 : f32 to vector<2x32xf32>
    %86 = arith.addf %85, %84 : vector<2x32xf32>
    %87 = arith.divf %85, %86 : vector<2x32xf32>
    %88 = arith.mulf %79, %62 : vector<2x32xf32>
    %89 = arith.mulf %73, %81 : vector<2x32xf32>
    %90 = arith.addf %88, %89 : vector<2x32xf32>
    %91 = math.tanh %90 : vector<2x32xf32>
    %92 = arith.mulf %87, %91 : vector<2x32xf32>
    %93 = vector.extract_strided_slice %5 {offsets = [6, 0], sizes = [2, 128], strides = [1, 1]} : vector<16x128xf32> to vector<2x128xf32>
    %cst_21 = arith.constant dense<0.000000e+00> : vector<2x128xf32>
    %94 = tpu.matmul %92, %6, %cst_21 {dimension_numbers = #tpu.dot_dimension_numbers<[1], [0], [0], [1], [0, 0, 1, 1], [], []>} : vector<2x32xf32>, vector<32x128xf32>, vector<2x128xf32> -> vector<2x128xf32>
    %95 = arith.addf %93, %94 : vector<2x128xf32>
    %96 = vector.extract_strided_slice %95 {offsets = [0, 0], sizes = [2, 32], strides = [1, 1]} : vector<2x128xf32> to vector<2x32xf32>
    %97 = arith.negf %96 : vector<2x32xf32>
    %98 = math.exp %97 : vector<2x32xf32>
    %cst_22 = arith.constant 1.000000e+00 : f32
    %99 = vector.broadcast %cst_22 : f32 to vector<2x32xf32>
    %100 = arith.addf %99, %98 : vector<2x32xf32>
    %101 = arith.divf %99, %100 : vector<2x32xf32>
    %102 = vector.extract_strided_slice %95 {offsets = [0, 32], sizes = [2, 32], strides = [1, 1]} : vector<2x128xf32> to vector<2x32xf32>
    %103 = arith.negf %102 : vector<2x32xf32>
    %104 = math.exp %103 : vector<2x32xf32>
    %cst_23 = arith.constant 1.000000e+00 : f32
    %105 = vector.broadcast %cst_23 : f32 to vector<2x32xf32>
    %106 = arith.addf %105, %104 : vector<2x32xf32>
    %107 = arith.divf %105, %106 : vector<2x32xf32>
    %108 = vector.extract_strided_slice %95 {offsets = [0, 64], sizes = [2, 32], strides = [1, 1]} : vector<2x128xf32> to vector<2x32xf32>
    %109 = math.tanh %108 : vector<2x32xf32>
    %110 = vector.extract_strided_slice %95 {offsets = [0, 96], sizes = [2, 32], strides = [1, 1]} : vector<2x128xf32> to vector<2x32xf32>
    %111 = arith.negf %110 : vector<2x32xf32>
    %112 = math.exp %111 : vector<2x32xf32>
    %cst_24 = arith.constant 1.000000e+00 : f32
    %113 = vector.broadcast %cst_24 : f32 to vector<2x32xf32>
    %114 = arith.addf %113, %112 : vector<2x32xf32>
    %115 = arith.divf %113, %114 : vector<2x32xf32>
    %116 = arith.mulf %107, %90 : vector<2x32xf32>
    %117 = arith.mulf %101, %109 : vector<2x32xf32>
    %118 = arith.addf %116, %117 : vector<2x32xf32>
    %119 = math.tanh %118 : vector<2x32xf32>
    %120 = arith.mulf %115, %119 : vector<2x32xf32>
    %121 = vector.extract_strided_slice %5 {offsets = [8, 0], sizes = [2, 128], strides = [1, 1]} : vector<16x128xf32> to vector<2x128xf32>
    %cst_25 = arith.constant dense<0.000000e+00> : vector<2x128xf32>
    %122 = tpu.matmul %120, %6, %cst_25 {dimension_numbers = #tpu.dot_dimension_numbers<[1], [0], [0], [1], [0, 0, 1, 1], [], []>} : vector<2x32xf32>, vector<32x128xf32>, vector<2x128xf32> -> vector<2x128xf32>
    %123 = arith.addf %121, %122 : vector<2x128xf32>
    %124 = vector.extract_strided_slice %123 {offsets = [0, 0], sizes = [2, 32], strides = [1, 1]} : vector<2x128xf32> to vector<2x32xf32>
    %125 = arith.negf %124 : vector<2x32xf32>
    %126 = math.exp %125 : vector<2x32xf32>
    %cst_26 = arith.constant 1.000000e+00 : f32
    %127 = vector.broadcast %cst_26 : f32 to vector<2x32xf32>
    %128 = arith.addf %127, %126 : vector<2x32xf32>
    %129 = arith.divf %127, %128 : vector<2x32xf32>
    %130 = vector.extract_strided_slice %123 {offsets = [0, 32], sizes = [2, 32], strides = [1, 1]} : vector<2x128xf32> to vector<2x32xf32>
    %131 = arith.negf %130 : vector<2x32xf32>
    %132 = math.exp %131 : vector<2x32xf32>
    %cst_27 = arith.constant 1.000000e+00 : f32
    %133 = vector.broadcast %cst_27 : f32 to vector<2x32xf32>
    %134 = arith.addf %133, %132 : vector<2x32xf32>
    %135 = arith.divf %133, %134 : vector<2x32xf32>
    %136 = vector.extract_strided_slice %123 {offsets = [0, 64], sizes = [2, 32], strides = [1, 1]} : vector<2x128xf32> to vector<2x32xf32>
    %137 = math.tanh %136 : vector<2x32xf32>
    %138 = vector.extract_strided_slice %123 {offsets = [0, 96], sizes = [2, 32], strides = [1, 1]} : vector<2x128xf32> to vector<2x32xf32>
    %139 = arith.negf %138 : vector<2x32xf32>
    %140 = math.exp %139 : vector<2x32xf32>
    %cst_28 = arith.constant 1.000000e+00 : f32
    %141 = vector.broadcast %cst_28 : f32 to vector<2x32xf32>
    %142 = arith.addf %141, %140 : vector<2x32xf32>
    %143 = arith.divf %141, %142 : vector<2x32xf32>
    %144 = arith.mulf %135, %118 : vector<2x32xf32>
    %145 = arith.mulf %129, %137 : vector<2x32xf32>
    %146 = arith.addf %144, %145 : vector<2x32xf32>
    %147 = math.tanh %146 : vector<2x32xf32>
    %148 = arith.mulf %143, %147 : vector<2x32xf32>
    %149 = vector.extract_strided_slice %5 {offsets = [10, 0], sizes = [2, 128], strides = [1, 1]} : vector<16x128xf32> to vector<2x128xf32>
    %cst_29 = arith.constant dense<0.000000e+00> : vector<2x128xf32>
    %150 = tpu.matmul %148, %6, %cst_29 {dimension_numbers = #tpu.dot_dimension_numbers<[1], [0], [0], [1], [0, 0, 1, 1], [], []>} : vector<2x32xf32>, vector<32x128xf32>, vector<2x128xf32> -> vector<2x128xf32>
    %151 = arith.addf %149, %150 : vector<2x128xf32>
    %152 = vector.extract_strided_slice %151 {offsets = [0, 0], sizes = [2, 32], strides = [1, 1]} : vector<2x128xf32> to vector<2x32xf32>
    %153 = arith.negf %152 : vector<2x32xf32>
    %154 = math.exp %153 : vector<2x32xf32>
    %cst_30 = arith.constant 1.000000e+00 : f32
    %155 = vector.broadcast %cst_30 : f32 to vector<2x32xf32>
    %156 = arith.addf %155, %154 : vector<2x32xf32>
    %157 = arith.divf %155, %156 : vector<2x32xf32>
    %158 = vector.extract_strided_slice %151 {offsets = [0, 32], sizes = [2, 32], strides = [1, 1]} : vector<2x128xf32> to vector<2x32xf32>
    %159 = arith.negf %158 : vector<2x32xf32>
    %160 = math.exp %159 : vector<2x32xf32>
    %cst_31 = arith.constant 1.000000e+00 : f32
    %161 = vector.broadcast %cst_31 : f32 to vector<2x32xf32>
    %162 = arith.addf %161, %160 : vector<2x32xf32>
    %163 = arith.divf %161, %162 : vector<2x32xf32>
    %164 = vector.extract_strided_slice %151 {offsets = [0, 64], sizes = [2, 32], strides = [1, 1]} : vector<2x128xf32> to vector<2x32xf32>
    %165 = math.tanh %164 : vector<2x32xf32>
    %166 = vector.extract_strided_slice %151 {offsets = [0, 96], sizes = [2, 32], strides = [1, 1]} : vector<2x128xf32> to vector<2x32xf32>
    %167 = arith.negf %166 : vector<2x32xf32>
    %168 = math.exp %167 : vector<2x32xf32>
    %cst_32 = arith.constant 1.000000e+00 : f32
    %169 = vector.broadcast %cst_32 : f32 to vector<2x32xf32>
    %170 = arith.addf %169, %168 : vector<2x32xf32>
    %171 = arith.divf %169, %170 : vector<2x32xf32>
    %172 = arith.mulf %163, %146 : vector<2x32xf32>
    %173 = arith.mulf %157, %165 : vector<2x32xf32>
    %174 = arith.addf %172, %173 : vector<2x32xf32>
    %175 = math.tanh %174 : vector<2x32xf32>
    %176 = arith.mulf %171, %175 : vector<2x32xf32>
    %177 = vector.extract_strided_slice %5 {offsets = [12, 0], sizes = [2, 128], strides = [1, 1]} : vector<16x128xf32> to vector<2x128xf32>
    %cst_33 = arith.constant dense<0.000000e+00> : vector<2x128xf32>
    %178 = tpu.matmul %176, %6, %cst_33 {dimension_numbers = #tpu.dot_dimension_numbers<[1], [0], [0], [1], [0, 0, 1, 1], [], []>} : vector<2x32xf32>, vector<32x128xf32>, vector<2x128xf32> -> vector<2x128xf32>
    %179 = arith.addf %177, %178 : vector<2x128xf32>
    %180 = vector.extract_strided_slice %179 {offsets = [0, 0], sizes = [2, 32], strides = [1, 1]} : vector<2x128xf32> to vector<2x32xf32>
    %181 = arith.negf %180 : vector<2x32xf32>
    %182 = math.exp %181 : vector<2x32xf32>
    %cst_34 = arith.constant 1.000000e+00 : f32
    %183 = vector.broadcast %cst_34 : f32 to vector<2x32xf32>
    %184 = arith.addf %183, %182 : vector<2x32xf32>
    %185 = arith.divf %183, %184 : vector<2x32xf32>
    %186 = vector.extract_strided_slice %179 {offsets = [0, 32], sizes = [2, 32], strides = [1, 1]} : vector<2x128xf32> to vector<2x32xf32>
    %187 = arith.negf %186 : vector<2x32xf32>
    %188 = math.exp %187 : vector<2x32xf32>
    %cst_35 = arith.constant 1.000000e+00 : f32
    %189 = vector.broadcast %cst_35 : f32 to vector<2x32xf32>
    %190 = arith.addf %189, %188 : vector<2x32xf32>
    %191 = arith.divf %189, %190 : vector<2x32xf32>
    %192 = vector.extract_strided_slice %179 {offsets = [0, 64], sizes = [2, 32], strides = [1, 1]} : vector<2x128xf32> to vector<2x32xf32>
    %193 = math.tanh %192 : vector<2x32xf32>
    %194 = vector.extract_strided_slice %179 {offsets = [0, 96], sizes = [2, 32], strides = [1, 1]} : vector<2x128xf32> to vector<2x32xf32>
    %195 = arith.negf %194 : vector<2x32xf32>
    %196 = math.exp %195 : vector<2x32xf32>
    %cst_36 = arith.constant 1.000000e+00 : f32
    %197 = vector.broadcast %cst_36 : f32 to vector<2x32xf32>
    %198 = arith.addf %197, %196 : vector<2x32xf32>
    %199 = arith.divf %197, %198 : vector<2x32xf32>
    %200 = arith.mulf %191, %174 : vector<2x32xf32>
    %201 = arith.mulf %185, %193 : vector<2x32xf32>
    %202 = arith.addf %200, %201 : vector<2x32xf32>
    %203 = math.tanh %202 : vector<2x32xf32>
    %204 = arith.mulf %199, %203 : vector<2x32xf32>
    %205 = vector.extract_strided_slice %5 {offsets = [14, 0], sizes = [2, 128], strides = [1, 1]} : vector<16x128xf32> to vector<2x128xf32>
    %cst_37 = arith.constant dense<0.000000e+00> : vector<2x128xf32>
    %206 = tpu.matmul %204, %6, %cst_37 {dimension_numbers = #tpu.dot_dimension_numbers<[1], [0], [0], [1], [0, 0, 1, 1], [], []>} : vector<2x32xf32>, vector<32x128xf32>, vector<2x128xf32> -> vector<2x128xf32>
    %207 = arith.addf %205, %206 : vector<2x128xf32>
    %208 = vector.extract_strided_slice %207 {offsets = [0, 0], sizes = [2, 32], strides = [1, 1]} : vector<2x128xf32> to vector<2x32xf32>
    %209 = arith.negf %208 : vector<2x32xf32>
    %210 = math.exp %209 : vector<2x32xf32>
    %cst_38 = arith.constant 1.000000e+00 : f32
    %211 = vector.broadcast %cst_38 : f32 to vector<2x32xf32>
    %212 = arith.addf %211, %210 : vector<2x32xf32>
    %213 = arith.divf %211, %212 : vector<2x32xf32>
    %214 = vector.extract_strided_slice %207 {offsets = [0, 32], sizes = [2, 32], strides = [1, 1]} : vector<2x128xf32> to vector<2x32xf32>
    %215 = arith.negf %214 : vector<2x32xf32>
    %216 = math.exp %215 : vector<2x32xf32>
    %cst_39 = arith.constant 1.000000e+00 : f32
    %217 = vector.broadcast %cst_39 : f32 to vector<2x32xf32>
    %218 = arith.addf %217, %216 : vector<2x32xf32>
    %219 = arith.divf %217, %218 : vector<2x32xf32>
    %220 = vector.extract_strided_slice %207 {offsets = [0, 64], sizes = [2, 32], strides = [1, 1]} : vector<2x128xf32> to vector<2x32xf32>
    %221 = math.tanh %220 : vector<2x32xf32>
    %222 = vector.extract_strided_slice %207 {offsets = [0, 96], sizes = [2, 32], strides = [1, 1]} : vector<2x128xf32> to vector<2x32xf32>
    %223 = arith.negf %222 : vector<2x32xf32>
    %224 = math.exp %223 : vector<2x32xf32>
    %cst_40 = arith.constant 1.000000e+00 : f32
    %225 = vector.broadcast %cst_40 : f32 to vector<2x32xf32>
    %226 = arith.addf %225, %224 : vector<2x32xf32>
    %227 = arith.divf %225, %226 : vector<2x32xf32>
    %228 = arith.mulf %219, %202 : vector<2x32xf32>
    %229 = arith.mulf %213, %221 : vector<2x32xf32>
    %230 = arith.addf %228, %229 : vector<2x32xf32>
    %231 = math.tanh %230 : vector<2x32xf32>
    %232 = arith.mulf %227, %231 : vector<2x32xf32>
    %233 = tpu.concatenate %36, %64, %92, %120, %148, %176, %204, %232 in 0 : vector<2x32xf32>, vector<2x32xf32>, vector<2x32xf32>, vector<2x32xf32>, vector<2x32xf32>, vector<2x32xf32>, vector<2x32xf32>, vector<2x32xf32> -> vector<16x32xf32>
    %c0_41 = arith.constant 0 : index
    %c0_42 = arith.constant 0 : index
    %234 = vector.load %arg4[%c0_41, %c0_42] : memref<32x128xf32, #tpu.memory_space<vmem>>, vector<32x128xf32>
    %cst_43 = arith.constant dense<0.000000e+00> : vector<16x128xf32>
    %235 = tpu.matmul %233, %234, %cst_43 {dimension_numbers = #tpu.dot_dimension_numbers<[1], [0], [0], [1], [0, 0, 1, 1], [], []>} : vector<16x32xf32>, vector<32x128xf32>, vector<16x128xf32> -> vector<16x128xf32>
    %c0_44 = arith.constant 0 : index
    %c0_45 = arith.constant 0 : index
    %236 = vector.load %arg6[%c0_44, %c0_45] : memref<1x128xf32, #tpu.memory_space<vmem>>, vector<1x128xf32>
    %237 = vector.broadcast %236 : vector<1x128xf32> to vector<16x128xf32>
    %238 = arith.addf %235, %237 : vector<16x128xf32>
    %c0_46 = arith.constant 0 : index
    %c0_47 = arith.constant 0 : index
    %239 = vector.load %arg5[%c0_46, %c0_47] : memref<32x128xf32, #tpu.memory_space<vmem>>, vector<32x128xf32>
    %cst_48 = arith.constant 0.000000e+00 : f32
    %240 = vector.broadcast %cst_48 : f32 to vector<2x32xf32>
    %cst_49 = arith.constant 0.000000e+00 : f32
    %241 = vector.broadcast %cst_49 : f32 to vector<2x32xf32>
    %242 = vector.extract_strided_slice %238 {offsets = [0, 0], sizes = [2, 128], strides = [1, 1]} : vector<16x128xf32> to vector<2x128xf32>
    %cst_50 = arith.constant dense<0.000000e+00> : vector<2x128xf32>
    %243 = tpu.matmul %240, %239, %cst_50 {dimension_numbers = #tpu.dot_dimension_numbers<[1], [0], [0], [1], [0, 0, 1, 1], [], []>} : vector<2x32xf32>, vector<32x128xf32>, vector<2x128xf32> -> vector<2x128xf32>
    %244 = arith.addf %242, %243 : vector<2x128xf32>
    %245 = vector.extract_strided_slice %244 {offsets = [0, 0], sizes = [2, 32], strides = [1, 1]} : vector<2x128xf32> to vector<2x32xf32>
    %246 = arith.negf %245 : vector<2x32xf32>
    %247 = math.exp %246 : vector<2x32xf32>
    %cst_51 = arith.constant 1.000000e+00 : f32
    %248 = vector.broadcast %cst_51 : f32 to vector<2x32xf32>
    %249 = arith.addf %248, %247 : vector<2x32xf32>
    %250 = arith.divf %248, %249 : vector<2x32xf32>
    %251 = vector.extract_strided_slice %244 {offsets = [0, 32], sizes = [2, 32], strides = [1, 1]} : vector<2x128xf32> to vector<2x32xf32>
    %252 = arith.negf %251 : vector<2x32xf32>
    %253 = math.exp %252 : vector<2x32xf32>
    %cst_52 = arith.constant 1.000000e+00 : f32
    %254 = vector.broadcast %cst_52 : f32 to vector<2x32xf32>
    %255 = arith.addf %254, %253 : vector<2x32xf32>
    %256 = arith.divf %254, %255 : vector<2x32xf32>
    %257 = vector.extract_strided_slice %244 {offsets = [0, 64], sizes = [2, 32], strides = [1, 1]} : vector<2x128xf32> to vector<2x32xf32>
    %258 = math.tanh %257 : vector<2x32xf32>
    %259 = vector.extract_strided_slice %244 {offsets = [0, 96], sizes = [2, 32], strides = [1, 1]} : vector<2x128xf32> to vector<2x32xf32>
    %260 = arith.negf %259 : vector<2x32xf32>
    %261 = math.exp %260 : vector<2x32xf32>
    %cst_53 = arith.constant 1.000000e+00 : f32
    %262 = vector.broadcast %cst_53 : f32 to vector<2x32xf32>
    %263 = arith.addf %262, %261 : vector<2x32xf32>
    %264 = arith.divf %262, %263 : vector<2x32xf32>
    %265 = arith.mulf %256, %241 : vector<2x32xf32>
    %266 = arith.mulf %250, %258 : vector<2x32xf32>
    %267 = arith.addf %265, %266 : vector<2x32xf32>
    %268 = math.tanh %267 : vector<2x32xf32>
    %269 = arith.mulf %264, %268 : vector<2x32xf32>
    %270 = vector.extract_strided_slice %238 {offsets = [2, 0], sizes = [2, 128], strides = [1, 1]} : vector<16x128xf32> to vector<2x128xf32>
    %cst_54 = arith.constant dense<0.000000e+00> : vector<2x128xf32>
    %271 = tpu.matmul %269, %239, %cst_54 {dimension_numbers = #tpu.dot_dimension_numbers<[1], [0], [0], [1], [0, 0, 1, 1], [], []>} : vector<2x32xf32>, vector<32x128xf32>, vector<2x128xf32> -> vector<2x128xf32>
    %272 = arith.addf %270, %271 : vector<2x128xf32>
    %273 = vector.extract_strided_slice %272 {offsets = [0, 0], sizes = [2, 32], strides = [1, 1]} : vector<2x128xf32> to vector<2x32xf32>
    %274 = arith.negf %273 : vector<2x32xf32>
    %275 = math.exp %274 : vector<2x32xf32>
    %cst_55 = arith.constant 1.000000e+00 : f32
    %276 = vector.broadcast %cst_55 : f32 to vector<2x32xf32>
    %277 = arith.addf %276, %275 : vector<2x32xf32>
    %278 = arith.divf %276, %277 : vector<2x32xf32>
    %279 = vector.extract_strided_slice %272 {offsets = [0, 32], sizes = [2, 32], strides = [1, 1]} : vector<2x128xf32> to vector<2x32xf32>
    %280 = arith.negf %279 : vector<2x32xf32>
    %281 = math.exp %280 : vector<2x32xf32>
    %cst_56 = arith.constant 1.000000e+00 : f32
    %282 = vector.broadcast %cst_56 : f32 to vector<2x32xf32>
    %283 = arith.addf %282, %281 : vector<2x32xf32>
    %284 = arith.divf %282, %283 : vector<2x32xf32>
    %285 = vector.extract_strided_slice %272 {offsets = [0, 64], sizes = [2, 32], strides = [1, 1]} : vector<2x128xf32> to vector<2x32xf32>
    %286 = math.tanh %285 : vector<2x32xf32>
    %287 = vector.extract_strided_slice %272 {offsets = [0, 96], sizes = [2, 32], strides = [1, 1]} : vector<2x128xf32> to vector<2x32xf32>
    %288 = arith.negf %287 : vector<2x32xf32>
    %289 = math.exp %288 : vector<2x32xf32>
    %cst_57 = arith.constant 1.000000e+00 : f32
    %290 = vector.broadcast %cst_57 : f32 to vector<2x32xf32>
    %291 = arith.addf %290, %289 : vector<2x32xf32>
    %292 = arith.divf %290, %291 : vector<2x32xf32>
    %293 = arith.mulf %284, %267 : vector<2x32xf32>
    %294 = arith.mulf %278, %286 : vector<2x32xf32>
    %295 = arith.addf %293, %294 : vector<2x32xf32>
    %296 = math.tanh %295 : vector<2x32xf32>
    %297 = arith.mulf %292, %296 : vector<2x32xf32>
    %298 = vector.extract_strided_slice %238 {offsets = [4, 0], sizes = [2, 128], strides = [1, 1]} : vector<16x128xf32> to vector<2x128xf32>
    %cst_58 = arith.constant dense<0.000000e+00> : vector<2x128xf32>
    %299 = tpu.matmul %297, %239, %cst_58 {dimension_numbers = #tpu.dot_dimension_numbers<[1], [0], [0], [1], [0, 0, 1, 1], [], []>} : vector<2x32xf32>, vector<32x128xf32>, vector<2x128xf32> -> vector<2x128xf32>
    %300 = arith.addf %298, %299 : vector<2x128xf32>
    %301 = vector.extract_strided_slice %300 {offsets = [0, 0], sizes = [2, 32], strides = [1, 1]} : vector<2x128xf32> to vector<2x32xf32>
    %302 = arith.negf %301 : vector<2x32xf32>
    %303 = math.exp %302 : vector<2x32xf32>
    %cst_59 = arith.constant 1.000000e+00 : f32
    %304 = vector.broadcast %cst_59 : f32 to vector<2x32xf32>
    %305 = arith.addf %304, %303 : vector<2x32xf32>
    %306 = arith.divf %304, %305 : vector<2x32xf32>
    %307 = vector.extract_strided_slice %300 {offsets = [0, 32], sizes = [2, 32], strides = [1, 1]} : vector<2x128xf32> to vector<2x32xf32>
    %308 = arith.negf %307 : vector<2x32xf32>
    %309 = math.exp %308 : vector<2x32xf32>
    %cst_60 = arith.constant 1.000000e+00 : f32
    %310 = vector.broadcast %cst_60 : f32 to vector<2x32xf32>
    %311 = arith.addf %310, %309 : vector<2x32xf32>
    %312 = arith.divf %310, %311 : vector<2x32xf32>
    %313 = vector.extract_strided_slice %300 {offsets = [0, 64], sizes = [2, 32], strides = [1, 1]} : vector<2x128xf32> to vector<2x32xf32>
    %314 = math.tanh %313 : vector<2x32xf32>
    %315 = vector.extract_strided_slice %300 {offsets = [0, 96], sizes = [2, 32], strides = [1, 1]} : vector<2x128xf32> to vector<2x32xf32>
    %316 = arith.negf %315 : vector<2x32xf32>
    %317 = math.exp %316 : vector<2x32xf32>
    %cst_61 = arith.constant 1.000000e+00 : f32
    %318 = vector.broadcast %cst_61 : f32 to vector<2x32xf32>
    %319 = arith.addf %318, %317 : vector<2x32xf32>
    %320 = arith.divf %318, %319 : vector<2x32xf32>
    %321 = arith.mulf %312, %295 : vector<2x32xf32>
    %322 = arith.mulf %306, %314 : vector<2x32xf32>
    %323 = arith.addf %321, %322 : vector<2x32xf32>
    %324 = math.tanh %323 : vector<2x32xf32>
    %325 = arith.mulf %320, %324 : vector<2x32xf32>
    %326 = vector.extract_strided_slice %238 {offsets = [6, 0], sizes = [2, 128], strides = [1, 1]} : vector<16x128xf32> to vector<2x128xf32>
    %cst_62 = arith.constant dense<0.000000e+00> : vector<2x128xf32>
    %327 = tpu.matmul %325, %239, %cst_62 {dimension_numbers = #tpu.dot_dimension_numbers<[1], [0], [0], [1], [0, 0, 1, 1], [], []>} : vector<2x32xf32>, vector<32x128xf32>, vector<2x128xf32> -> vector<2x128xf32>
    %328 = arith.addf %326, %327 : vector<2x128xf32>
    %329 = vector.extract_strided_slice %328 {offsets = [0, 0], sizes = [2, 32], strides = [1, 1]} : vector<2x128xf32> to vector<2x32xf32>
    %330 = arith.negf %329 : vector<2x32xf32>
    %331 = math.exp %330 : vector<2x32xf32>
    %cst_63 = arith.constant 1.000000e+00 : f32
    %332 = vector.broadcast %cst_63 : f32 to vector<2x32xf32>
    %333 = arith.addf %332, %331 : vector<2x32xf32>
    %334 = arith.divf %332, %333 : vector<2x32xf32>
    %335 = vector.extract_strided_slice %328 {offsets = [0, 32], sizes = [2, 32], strides = [1, 1]} : vector<2x128xf32> to vector<2x32xf32>
    %336 = arith.negf %335 : vector<2x32xf32>
    %337 = math.exp %336 : vector<2x32xf32>
    %cst_64 = arith.constant 1.000000e+00 : f32
    %338 = vector.broadcast %cst_64 : f32 to vector<2x32xf32>
    %339 = arith.addf %338, %337 : vector<2x32xf32>
    %340 = arith.divf %338, %339 : vector<2x32xf32>
    %341 = vector.extract_strided_slice %328 {offsets = [0, 64], sizes = [2, 32], strides = [1, 1]} : vector<2x128xf32> to vector<2x32xf32>
    %342 = math.tanh %341 : vector<2x32xf32>
    %343 = vector.extract_strided_slice %328 {offsets = [0, 96], sizes = [2, 32], strides = [1, 1]} : vector<2x128xf32> to vector<2x32xf32>
    %344 = arith.negf %343 : vector<2x32xf32>
    %345 = math.exp %344 : vector<2x32xf32>
    %cst_65 = arith.constant 1.000000e+00 : f32
    %346 = vector.broadcast %cst_65 : f32 to vector<2x32xf32>
    %347 = arith.addf %346, %345 : vector<2x32xf32>
    %348 = arith.divf %346, %347 : vector<2x32xf32>
    %349 = arith.mulf %340, %323 : vector<2x32xf32>
    %350 = arith.mulf %334, %342 : vector<2x32xf32>
    %351 = arith.addf %349, %350 : vector<2x32xf32>
    %352 = math.tanh %351 : vector<2x32xf32>
    %353 = arith.mulf %348, %352 : vector<2x32xf32>
    %354 = vector.extract_strided_slice %238 {offsets = [8, 0], sizes = [2, 128], strides = [1, 1]} : vector<16x128xf32> to vector<2x128xf32>
    %cst_66 = arith.constant dense<0.000000e+00> : vector<2x128xf32>
    %355 = tpu.matmul %353, %239, %cst_66 {dimension_numbers = #tpu.dot_dimension_numbers<[1], [0], [0], [1], [0, 0, 1, 1], [], []>} : vector<2x32xf32>, vector<32x128xf32>, vector<2x128xf32> -> vector<2x128xf32>
    %356 = arith.addf %354, %355 : vector<2x128xf32>
    %357 = vector.extract_strided_slice %356 {offsets = [0, 0], sizes = [2, 32], strides = [1, 1]} : vector<2x128xf32> to vector<2x32xf32>
    %358 = arith.negf %357 : vector<2x32xf32>
    %359 = math.exp %358 : vector<2x32xf32>
    %cst_67 = arith.constant 1.000000e+00 : f32
    %360 = vector.broadcast %cst_67 : f32 to vector<2x32xf32>
    %361 = arith.addf %360, %359 : vector<2x32xf32>
    %362 = arith.divf %360, %361 : vector<2x32xf32>
    %363 = vector.extract_strided_slice %356 {offsets = [0, 32], sizes = [2, 32], strides = [1, 1]} : vector<2x128xf32> to vector<2x32xf32>
    %364 = arith.negf %363 : vector<2x32xf32>
    %365 = math.exp %364 : vector<2x32xf32>
    %cst_68 = arith.constant 1.000000e+00 : f32
    %366 = vector.broadcast %cst_68 : f32 to vector<2x32xf32>
    %367 = arith.addf %366, %365 : vector<2x32xf32>
    %368 = arith.divf %366, %367 : vector<2x32xf32>
    %369 = vector.extract_strided_slice %356 {offsets = [0, 64], sizes = [2, 32], strides = [1, 1]} : vector<2x128xf32> to vector<2x32xf32>
    %370 = math.tanh %369 : vector<2x32xf32>
    %371 = vector.extract_strided_slice %356 {offsets = [0, 96], sizes = [2, 32], strides = [1, 1]} : vector<2x128xf32> to vector<2x32xf32>
    %372 = arith.negf %371 : vector<2x32xf32>
    %373 = math.exp %372 : vector<2x32xf32>
    %cst_69 = arith.constant 1.000000e+00 : f32
    %374 = vector.broadcast %cst_69 : f32 to vector<2x32xf32>
    %375 = arith.addf %374, %373 : vector<2x32xf32>
    %376 = arith.divf %374, %375 : vector<2x32xf32>
    %377 = arith.mulf %368, %351 : vector<2x32xf32>
    %378 = arith.mulf %362, %370 : vector<2x32xf32>
    %379 = arith.addf %377, %378 : vector<2x32xf32>
    %380 = math.tanh %379 : vector<2x32xf32>
    %381 = arith.mulf %376, %380 : vector<2x32xf32>
    %382 = vector.extract_strided_slice %238 {offsets = [10, 0], sizes = [2, 128], strides = [1, 1]} : vector<16x128xf32> to vector<2x128xf32>
    %cst_70 = arith.constant dense<0.000000e+00> : vector<2x128xf32>
    %383 = tpu.matmul %381, %239, %cst_70 {dimension_numbers = #tpu.dot_dimension_numbers<[1], [0], [0], [1], [0, 0, 1, 1], [], []>} : vector<2x32xf32>, vector<32x128xf32>, vector<2x128xf32> -> vector<2x128xf32>
    %384 = arith.addf %382, %383 : vector<2x128xf32>
    %385 = vector.extract_strided_slice %384 {offsets = [0, 0], sizes = [2, 32], strides = [1, 1]} : vector<2x128xf32> to vector<2x32xf32>
    %386 = arith.negf %385 : vector<2x32xf32>
    %387 = math.exp %386 : vector<2x32xf32>
    %cst_71 = arith.constant 1.000000e+00 : f32
    %388 = vector.broadcast %cst_71 : f32 to vector<2x32xf32>
    %389 = arith.addf %388, %387 : vector<2x32xf32>
    %390 = arith.divf %388, %389 : vector<2x32xf32>
    %391 = vector.extract_strided_slice %384 {offsets = [0, 32], sizes = [2, 32], strides = [1, 1]} : vector<2x128xf32> to vector<2x32xf32>
    %392 = arith.negf %391 : vector<2x32xf32>
    %393 = math.exp %392 : vector<2x32xf32>
    %cst_72 = arith.constant 1.000000e+00 : f32
    %394 = vector.broadcast %cst_72 : f32 to vector<2x32xf32>
    %395 = arith.addf %394, %393 : vector<2x32xf32>
    %396 = arith.divf %394, %395 : vector<2x32xf32>
    %397 = vector.extract_strided_slice %384 {offsets = [0, 64], sizes = [2, 32], strides = [1, 1]} : vector<2x128xf32> to vector<2x32xf32>
    %398 = math.tanh %397 : vector<2x32xf32>
    %399 = vector.extract_strided_slice %384 {offsets = [0, 96], sizes = [2, 32], strides = [1, 1]} : vector<2x128xf32> to vector<2x32xf32>
    %400 = arith.negf %399 : vector<2x32xf32>
    %401 = math.exp %400 : vector<2x32xf32>
    %cst_73 = arith.constant 1.000000e+00 : f32
    %402 = vector.broadcast %cst_73 : f32 to vector<2x32xf32>
    %403 = arith.addf %402, %401 : vector<2x32xf32>
    %404 = arith.divf %402, %403 : vector<2x32xf32>
    %405 = arith.mulf %396, %379 : vector<2x32xf32>
    %406 = arith.mulf %390, %398 : vector<2x32xf32>
    %407 = arith.addf %405, %406 : vector<2x32xf32>
    %408 = math.tanh %407 : vector<2x32xf32>
    %409 = arith.mulf %404, %408 : vector<2x32xf32>
    %410 = vector.extract_strided_slice %238 {offsets = [12, 0], sizes = [2, 128], strides = [1, 1]} : vector<16x128xf32> to vector<2x128xf32>
    %cst_74 = arith.constant dense<0.000000e+00> : vector<2x128xf32>
    %411 = tpu.matmul %409, %239, %cst_74 {dimension_numbers = #tpu.dot_dimension_numbers<[1], [0], [0], [1], [0, 0, 1, 1], [], []>} : vector<2x32xf32>, vector<32x128xf32>, vector<2x128xf32> -> vector<2x128xf32>
    %412 = arith.addf %410, %411 : vector<2x128xf32>
    %413 = vector.extract_strided_slice %412 {offsets = [0, 0], sizes = [2, 32], strides = [1, 1]} : vector<2x128xf32> to vector<2x32xf32>
    %414 = arith.negf %413 : vector<2x32xf32>
    %415 = math.exp %414 : vector<2x32xf32>
    %cst_75 = arith.constant 1.000000e+00 : f32
    %416 = vector.broadcast %cst_75 : f32 to vector<2x32xf32>
    %417 = arith.addf %416, %415 : vector<2x32xf32>
    %418 = arith.divf %416, %417 : vector<2x32xf32>
    %419 = vector.extract_strided_slice %412 {offsets = [0, 32], sizes = [2, 32], strides = [1, 1]} : vector<2x128xf32> to vector<2x32xf32>
    %420 = arith.negf %419 : vector<2x32xf32>
    %421 = math.exp %420 : vector<2x32xf32>
    %cst_76 = arith.constant 1.000000e+00 : f32
    %422 = vector.broadcast %cst_76 : f32 to vector<2x32xf32>
    %423 = arith.addf %422, %421 : vector<2x32xf32>
    %424 = arith.divf %422, %423 : vector<2x32xf32>
    %425 = vector.extract_strided_slice %412 {offsets = [0, 64], sizes = [2, 32], strides = [1, 1]} : vector<2x128xf32> to vector<2x32xf32>
    %426 = math.tanh %425 : vector<2x32xf32>
    %427 = vector.extract_strided_slice %412 {offsets = [0, 96], sizes = [2, 32], strides = [1, 1]} : vector<2x128xf32> to vector<2x32xf32>
    %428 = arith.negf %427 : vector<2x32xf32>
    %429 = math.exp %428 : vector<2x32xf32>
    %cst_77 = arith.constant 1.000000e+00 : f32
    %430 = vector.broadcast %cst_77 : f32 to vector<2x32xf32>
    %431 = arith.addf %430, %429 : vector<2x32xf32>
    %432 = arith.divf %430, %431 : vector<2x32xf32>
    %433 = arith.mulf %424, %407 : vector<2x32xf32>
    %434 = arith.mulf %418, %426 : vector<2x32xf32>
    %435 = arith.addf %433, %434 : vector<2x32xf32>
    %436 = math.tanh %435 : vector<2x32xf32>
    %437 = arith.mulf %432, %436 : vector<2x32xf32>
    %438 = vector.extract_strided_slice %238 {offsets = [14, 0], sizes = [2, 128], strides = [1, 1]} : vector<16x128xf32> to vector<2x128xf32>
    %cst_78 = arith.constant dense<0.000000e+00> : vector<2x128xf32>
    %439 = tpu.matmul %437, %239, %cst_78 {dimension_numbers = #tpu.dot_dimension_numbers<[1], [0], [0], [1], [0, 0, 1, 1], [], []>} : vector<2x32xf32>, vector<32x128xf32>, vector<2x128xf32> -> vector<2x128xf32>
    %440 = arith.addf %438, %439 : vector<2x128xf32>
    %441 = vector.extract_strided_slice %440 {offsets = [0, 0], sizes = [2, 32], strides = [1, 1]} : vector<2x128xf32> to vector<2x32xf32>
    %442 = arith.negf %441 : vector<2x32xf32>
    %443 = math.exp %442 : vector<2x32xf32>
    %cst_79 = arith.constant 1.000000e+00 : f32
    %444 = vector.broadcast %cst_79 : f32 to vector<2x32xf32>
    %445 = arith.addf %444, %443 : vector<2x32xf32>
    %446 = arith.divf %444, %445 : vector<2x32xf32>
    %447 = vector.extract_strided_slice %440 {offsets = [0, 32], sizes = [2, 32], strides = [1, 1]} : vector<2x128xf32> to vector<2x32xf32>
    %448 = arith.negf %447 : vector<2x32xf32>
    %449 = math.exp %448 : vector<2x32xf32>
    %cst_80 = arith.constant 1.000000e+00 : f32
    %450 = vector.broadcast %cst_80 : f32 to vector<2x32xf32>
    %451 = arith.addf %450, %449 : vector<2x32xf32>
    %452 = arith.divf %450, %451 : vector<2x32xf32>
    %453 = vector.extract_strided_slice %440 {offsets = [0, 64], sizes = [2, 32], strides = [1, 1]} : vector<2x128xf32> to vector<2x32xf32>
    %454 = math.tanh %453 : vector<2x32xf32>
    %455 = vector.extract_strided_slice %440 {offsets = [0, 96], sizes = [2, 32], strides = [1, 1]} : vector<2x128xf32> to vector<2x32xf32>
    %456 = arith.negf %455 : vector<2x32xf32>
    %457 = math.exp %456 : vector<2x32xf32>
    %cst_81 = arith.constant 1.000000e+00 : f32
    %458 = vector.broadcast %cst_81 : f32 to vector<2x32xf32>
    %459 = arith.addf %458, %457 : vector<2x32xf32>
    %460 = arith.divf %458, %459 : vector<2x32xf32>
    %461 = arith.mulf %452, %435 : vector<2x32xf32>
    %462 = arith.mulf %446, %454 : vector<2x32xf32>
    %463 = arith.addf %461, %462 : vector<2x32xf32>
    %464 = math.tanh %463 : vector<2x32xf32>
    %465 = arith.mulf %460, %464 : vector<2x32xf32>
    %466 = tpu.concatenate %269, %297, %325, %353, %381, %409, %437, %465 in 0 : vector<2x32xf32>, vector<2x32xf32>, vector<2x32xf32>, vector<2x32xf32>, vector<2x32xf32>, vector<2x32xf32>, vector<2x32xf32>, vector<2x32xf32> -> vector<16x32xf32>
    %c0_82 = arith.constant 0 : index
    %c0_83 = arith.constant 0 : index
    %467 = vector.load %arg7[%c0_82, %c0_83] : memref<32x1xf32, #tpu.memory_space<vmem>>, vector<32x1xf32>
    %cst_84 = arith.constant dense<0.000000e+00> : vector<16x1xf32>
    %468 = tpu.matmul %466, %467, %cst_84 {dimension_numbers = #tpu.dot_dimension_numbers<[1], [0], [0], [1], [0, 0, 1, 1], [], []>} : vector<16x32xf32>, vector<32x1xf32>, vector<16x1xf32> -> vector<16x1xf32>
    %c0_85 = arith.constant 0 : index
    %c0_86 = arith.constant 0 : index
    %469 = vector.load %arg8[%c0_85, %c0_86] : memref<1x1xf32, #tpu.memory_space<vmem>>, vector<1x1xf32>
    %470 = vector.broadcast %469 : vector<1x1xf32> to vector<16x1xf32>
    %471 = arith.addf %468, %470 : vector<16x1xf32>
    %c0_87 = arith.constant 0 : index
    %c0_88 = arith.constant 0 : index
    %472 = vector.load %arg9[%c0_87, %c0_88] : memref<16x1xf32, #tpu.memory_space<vmem>>, vector<16x1xf32>
    tpu.vector_store %arg9[%c0_87, %c0_88], %471 {strides = array<i32>} : memref<16x1xf32, #tpu.memory_space<vmem>>, vector<16x1xf32>,
    return
  }
}

</mosaic_0001>

<bundles_post_ra>
// kernel: tpu_custom_call.1
= control target key start
LH: loop header
LB: loop body
LE: loop exit
PB: predicated region body
PF: predicated region fallthrough
CT: control target
= control target key end

     0   :  { %s3202_s0 = inlined_call_operand.hbm [shape: f32[16,16], index: 0, kind: input, shape index: {}]   ;;  %s3203_s1 = inlined_call_operand.hbm [shape: f32[16,128], index: 1, kind: input, shape index: {}]   ;;  %s3204_s2 = inlined_call_operand.vmem [shape: f32[32,128], index: 2, kind: input, shape index: {}]   ;;  %s3205_s3 = inlined_call_operand.vmem [shape: f32[1,128], index: 3, kind: input, shape index: {}]   ;;  %s3206_s4 = inlined_call_operand.hbm [shape: f32[32,128], index: 4, kind: input, shape index: {}]   ;;  %s3207_s5 = inlined_call_operand.hbm [shape: f32[32,128], index: 5, kind: input, shape index: {}]   ;;  %s3208_s6 = inlined_call_operand.vmem [shape: f32[1,128], index: 6, kind: input, shape index: {}]   ;;  %s3209_s7 = inlined_call_operand.vmem [shape: f32[32,1], index: 7, kind: input, shape index: {}]   ;;  %s3210_s8 = inlined_call_operand.<no memory space> [shape: f32[1,1], index: 8, kind: input, shape index: {}]   ;;  %s3211_s9 = inlined_call_operand.vmem [shape: f32[16,1], index: 9, kind: output, shape index: {}]  }
   0x1   :  { %v14_v0 = vstv %s3210_s8 }
   0x2   :  { %15 = vst [vmem:[#allocation2] sm:$0x1] %v14_v0 }
   0x3   :  { %16 = vsyncpa [#allocation4], 0 }
   0x4   :  { %17 = vsyncpa [#allocation6], 0 }
   0x5   :  { %18 = vsyncpa [#allocation9], 0  ;;  %s2778_s11 = smov [#allocation5]   ;;  %s2779_s13 = smov [#allocation3]  }
   0x6   :  { %s36_s12 = sshll.u32 %s2778_s11, 4  ;;  %s24_s14 = sshll.u32 %s2779_s13, 4  ;;  %s37_s12 = int_to_ptr.vmem [resolvable:$true] %s36_s12  ;;  %s2842_s14 = int_to_ptr.vmem [resolvable:$true] %s24_s14 }
   0x7   :  { %s2684_s17 = scalar_lea.hbm %s3203_s1, 256 }
   0x8   :  { %p2685_p0 = scmp.ne.s32.totalorder %s3203_s1, %s2684_s17  ;;  %p2688_p1 = scmp.lt.u32.totalorder %s2684_s17, %s3203_s1 }
   0xa   :  { %p2690_p2 = pnand %p2688_p1, %p2685_p0 }
   0xc   :  { %2693 = shalt.err (!%p2690_p2)
}
   0xd   :  { %s2694_s21 = scalar_lea.vmem %s37_s12, 256  ;;  %p2699_p4 = scmp.lt.s32.totalorder %s37_s12, %s37_s12 }
   0xe   :  { %p2695_p3 = scmp.ne.s32.totalorder %s37_s12, %s2694_s21  ;;  %p2700_p5 = scmp.lt.s32.totalorder %s2694_s21, %s2694_s21 }
  0x10   :  { %p2701_p6 = por %p2700_p5, %p2699_p4 }
  0x12   :  { %p2702_p7 = pnand %p2701_p6, %p2695_p3 }
  0x14   :  { %2705 = shalt.err (!%p2702_p7)
}
  0x15   :  { %s2780_s22 = smov 128   ;;  %s2781_s23 = smov 8  }
  0x16   :  { %42 = dma.hbm_to_vmem [thread:$0]  %s3203_s1, 256, %s37_s12, [#allocation6], %s2780_s22, %s2780_s22, %s2781_s23  }
  0x17   :  { %s2706_s28 = scalar_lea.hbm %s3202_s0, 256 }
  0x18   :  { %p2707_p8 = scmp.ne.s32.totalorder %s3202_s0, %s2706_s28  ;;  %p2710_p9 = scmp.lt.u32.totalorder %s2706_s28, %s3202_s0 }
  0x1a   :  { %p2712_p10 = pnand %p2710_p9, %p2707_p8 }
  0x1c   :  { %2715 = shalt.err (!%p2712_p10)
}
  0x1d   :  { %s2716_s13 = scalar_lea.vmem %s2842_s14, 256  ;;  %p2721_p12 = scmp.lt.s32.totalorder %s2842_s14, %s2842_s14 }
  0x1e   :  { %p2717_p11 = scmp.ne.s32.totalorder %s2842_s14, %s2716_s13  ;;  %p2722_p13 = scmp.lt.s32.totalorder %s2716_s13, %s2716_s13 }
  0x20   :  { %p2723_p0 = por %p2722_p13, %p2721_p12 }
  0x22   :  { %p2724_p1 = pnand %p2723_p0, %p2717_p11 }
  0x24   :  { %2727 = shalt.err (!%p2724_p1)
}
  0x25   :  { %30 = dma.hbm_to_vmem [thread:$0]  %s3202_s0, 256, %s2842_s14, [#allocation4], %s2780_s22, %s2780_s22, %s2781_s23  }
  0x26   :  { %s2782_s15 = smov [#allocation7]   ;;  %s2783_s17 = smov [#allocation8]  }
  0x27   :  { %s52_s16 = sshll.u32 %s2782_s15, 4  ;;  %s64_s18 = sshll.u32 %s2783_s17, 4  ;;  %s53_s16 = int_to_ptr.vmem [resolvable:$true] %s52_s16  ;;  %s2879_s18 = int_to_ptr.vmem [resolvable:$true] %s64_s18 }
  0x28   :  { %s2728_s20 = scalar_lea.hbm %s3206_s4, 512 }
  0x29   :  { %p2729_p2 = scmp.ne.s32.totalorder %s3206_s4, %s2728_s20  ;;  %p2732_p3 = scmp.lt.u32.totalorder %s2728_s20, %s3206_s4 }
  0x2b   :  { %p2734_p4 = pnand %p2732_p3, %p2729_p2 }
  0x2d   :  { %2737 = shalt.err (!%p2734_p4)
}
  0x2e   :  { %s2738_s0 = scalar_lea.vmem %s53_s16, 512  ;;  %p2743_p6 = scmp.lt.s32.totalorder %s53_s16, %s53_s16 }
  0x2f   :  { %p2739_p5 = scmp.ne.s32.totalorder %s53_s16, %s2738_s0  ;;  %p2744_p7 = scmp.lt.s32.totalorder %s2738_s0, %s2738_s0 }
  0x31   :  { %p2745_p8 = por %p2744_p7, %p2743_p6 }
  0x33   :  { %p2746_p9 = pnand %p2745_p8, %p2739_p5 }
  0x35   :  { %2749 = shalt.err (!%p2746_p9)
}
  0x36   :  { %58 = dma.hbm_to_vmem [thread:$0]  %s3206_s4, 512, %s53_s16, [#allocation6], %s2780_s22, %s2780_s22, %s2781_s23  }
  0x37   :  { %s2750_s30 = scalar_lea.hbm %s3207_s5, 512 }
  0x38   :  { %p2751_p10 = scmp.ne.s32.totalorder %s3207_s5, %s2750_s30  ;;  %p2754_p11 = scmp.lt.u32.totalorder %s2750_s30, %s3207_s5 }
  0x3a   :  { %p2756_p12 = pnand %p2754_p11, %p2751_p10 }
  0x3c   :  { %2759 = shalt.err (!%p2756_p12)
}
  0x3d   :  { %s2760_s12 = scalar_lea.vmem %s2879_s18, 512  ;;  %p2765_p0 = scmp.lt.s32.totalorder %s2879_s18, %s2879_s18 }
  0x3e   :  { %p2761_p13 = scmp.ne.s32.totalorder %s2879_s18, %s2760_s12  ;;  %p2766_p1 = scmp.lt.s32.totalorder %s2760_s12, %s2760_s12 }
  0x40   :  { %p2767_p2 = por %p2766_p1, %p2765_p0 }
  0x42   :  { %p2768_p3 = pnand %p2767_p2, %p2761_p13 }
  0x44   :  { %2771 = shalt.err (!%p2768_p3)
}
  0x45   :  { %70 = dma.hbm_to_vmem [thread:$0]  %s3207_s5, 512, %s2879_s18, [#allocation9], %s2780_s22, %s2780_s22, %s2781_s23  }
  0x46   :  { %2772 = dma.done.wait [#allocation4], 256  }
  0x47   :  { %2773 = vsyncadd [#allocation4], 4294967040 }
  0x48   :  { %2774 = dma.done.wait [#allocation6], 768  }
  0x49   :  { %2775 = vsyncadd [#allocation6], 4294966528 }
  0x4a   :  { %2776 = dma.done.wait [#allocation9], 512  }
  0x4b   :  { %2777 = vsyncadd [#allocation9], 4294966784  ;;  %v2784_v1 = vmov 0.0|0.0   ;;  %vm2785_vm0 = vmmov 0   ;;  %v2786_v2 = vmov 0.0   ;;  %vm100_vm1 = vcmask 130048  }
  0x4c   :  { %2433 = vmatprep.subr.bf16.mxu1 %v2784_v1  ;;  %2239 = vmatprep.mubr.msk.f32.mxu1 %vm2785_vm0, %v2786_v2  ;;  %v91_v3 = vld [vmem:[#allocation5] sm:$0xff]  ;;  %v92_v4 = vld [vmem:[#allocation5 + $0x8] sm:$0xff]  ;;  %v183_v7 = vld [vmem:[%s3204_s2 + $0x8] sm:$0xff]  ;;  %s2787_s21 = smov 64   ;;  %vm186_vm2 = vcmask 261120   ;;  %vm1029_vm3 = vcmask 1041408  }
  0x4d   :  { %v182_v5 = vld [vmem:[%s3204_s2] sm:$0xff]  ;;  %v2429_v6 = vpack.c.bf16 %v92_v4, %v91_v3  ;;  %v184_v10 = vld [vmem:[%s3204_s2 + $0x10] sm:$0xff]  ;;  %v185_v11 = vld [vmem:[%s3204_s2 + $0x18] sm:$0xff]  ;;  %vm1031_vm4 = vcmask 1043456   ;;  %vm1033_vm5 = vcmask 1045504   ;;  %vm2079_vm6 = vcmask 7168  }
  0x4e   :  { %v89_v8 = vld [vmem:[#allocation3] sm:$0xff]  ;;  %v2925_v9 = vpack.c.bf16 %v183_v7, %v182_v5  ;;  %v90_v12 = vld [vmem:[#allocation3 + $0x8] sm:$0xff]  ;;  %v2935_v13 = vpack.c.bf16 %v185_v11, %v184_v10  ;;  %v2089_v14 = vld [vmem:[%s3205_s3] ss:$0 sm:$0xff]  ;;  %s2788_s3 = smov 32  }
  0x4f   :  { %2228 = vmatprep.mubr.msk.f32.mxu0 %vm100_vm1, %v89_v8  ;;  %2430 = vmatprep.subr.bf16.mxu0 %v2429_v6 }
  0x50   :  { %2435 = vmatpush3.bf16.msra.mxu1 %v2925_v9  ;;  %2432 = vmatpush3.bf16.msra.mxu0 %v2429_v6 }
  0x51   :  { %2436 = vmatprep.subr.bf16.mxu1 %v2784_v1  ;;  %2439 = vmatprep.subr.bf16.mxu0 %v2784_v1 }
  0x53   :  { %2229 = vmatmul.mubr.msk.f32.vlgmr.msra.gmra.mrb[0].mxu0 %vm100_vm1, %v90_v12 }
  0x54   :  { %2438 = vmatpush3.bf16.msra.mxu1 %v2935_v13  ;;  %2441 = vmatpush3.bf16.msra.mxu0 %v2925_v9 }
  0x55   :  { %2442 = vmatprep.subr.bf16.mxu0 %v2784_v1  ;;  %2250 = vmatprep.mubr.msk.f32.mxu0 %vm2785_vm0, %v2786_v2 }
  0x56   :  { %2445 = vmatprep.subr.bf16.mxu1 %v2784_v1 }
  0x57   :  { %2240 = vmatmul.mubr.f32.vlgmr.msra.gmra.mrb[0].mxu1 %v2786_v2 }
  0x58   :  { %2444 = vmatpush3.bf16.msra.mxu0 %v2935_v13  ;;  %2447 = vmatpush3.bf16.msra.mxu1 %v2925_v9 }
  0x59   :  { %2448 = vmatprep.subr.bf16.mxu1 %v2784_v1  ;;  %2261 = vmatprep.mubr.msk.f32.mxu1 %vm2785_vm0, %v2786_v2 }
  0x5a   :  { %2451 = vmatprep.subr.bf16.mxu0 %v2784_v1 }
  0x5c   :  { %2450 = vmatpush3.bf16.msra.mxu1 %v2935_v13 }
  0x5d   :  { %2457 = vmatprep.subr.bf16.mxu1 %v2784_v1 }
 0x126   :  { %v2230_v15 = vpop.f32.mrb[0].mxu0 }
 0x127   :  { %v2958_v16 = vadd.f32 %v2230_v15, %v2089_v14  ;;  %v173_v17 = vpop.f32.mrb[1].mxu0 }
 0x128   :  { %v2960_v18 = vadd.f32 %v2089_v14, %v173_v17 }
 0x12a   :  { %v256_v19 = vpop.f32.mrb[0].mxu1 }
 0x12b   :  { %v260_v20 = vadd.f32 %v256_v19, %v2960_v18  ;;  %v2241_v21 = vpop.f32.mrb[1].mxu1 }
 0x12d   :  { %2556 = vtanh.f32 %v260_v20  ;;  %v2092_v23 = vmul.f32 -1.442695, %v260_v20 }
 0x12f   :  { %2558 = vpow2.f32 %v2092_v23 }
 0x137   :  { %v2557_v22 = vpop.eup %2556 }
 0x138   :  { %270 = vrot.lane.b32.xlu0 %v2557_v22, %s2787_s21 }
 0x139   :  { %v2559_v24 = vpop.eup %2558 }
 0x13a   :  { %v264_v25 = vadd.f32 1.0, %v2559_v24 }
 0x13c   :  { %2560 = vrcp.f32 %v264_v25 }
 0x146   :  { %v2561_v26 = vpop.eup %2560 }
 0x147   :  { %v268_v29 = vmul.f32 0.0, %v2561_v26 }
 0x1aa   :  { %v271_v27 = vpop.permute.xlu0 %270 }
 0x1ab   :  { %v273_v28 = vmul.f32 %v2561_v26, %v271_v27 }
 0x1ad   :  { %275 = vrot.lane.b32.xlu0 %v273_v28, %s2788_s3 }
 0x21f   :  { %v276_v30 = vpop.permute.xlu0 %275 }
 0x220   :  { %v278_v31 = vadd.f32 %v276_v30, %v268_v29 }
 0x222   :  { %2562 = vtanh.f32 %v278_v31  ;;  %v372_v47 = vrot.slane %v278_v31, 6 }
 0x22c   :  { %v2563_v32 = vpop.eup %2562 }
 0x22d   :  { %281 = vrot.lane.b32.xlu1 %v2563_v32, %s2787_s21 }
 0x29f   :  { %v282_v33 = vpop.permute.xlu1 %281 }
 0x2a0   :  { %v2966_v34 = vmul.f32 %v2561_v26, %v282_v33 }
 0x2a2   :  { %286 = vrot.lane.b32.xlu1 %v2966_v34, %s2788_s3 }
 0x314   :  { %v287_v35 = vpop.permute.xlu1 %286 }
 0x315   :  { %2251 = vmatmul.mubr.msk.f32.vlgmr.msra.gmra.mrb[2].mxu0 %vm186_vm2, %v287_v35 }
 0x316   :  { %2453 = vmatpush3.bf16.msra.mxu0 %v2925_v9  ;;  %2272 = vmatprep.mubr.msk.f32.mxu0 %vm2785_vm0, %v2786_v2 }
 0x317   :  { %2454 = vmatprep.subr.bf16.mxu0 %v2784_v1 }
 0x31a   :  { %2456 = vmatpush3.bf16.msra.mxu0 %v2935_v13 }
 0x31b   :  { %2463 = vmatprep.subr.bf16.mxu0 %v2784_v1 }
 0x3e8   :  { %v356_v36 = vpop.f32.mrb[2].mxu0 }
 0x3e9   :  { %v361_v37 = vrot.slane %v356_v36, 6  ;;  %v2252_v38 = vpop.f32.mrb[3].mxu0 }
 0x3eb   :  { %v363_v39 = vadd.f32 %v361_v37, %v2960_v18 }
 0x3ed   :  { %2564 = vtanh.f32 %v363_v39  ;;  %v2094_v41 = vmul.f32 -1.442695, %v363_v39 }
 0x3ef   :  { %2566 = vpow2.f32 %v2094_v41 }
 0x3f7   :  { %v2565_v40 = vpop.eup %2564 }
 0x3f8   :  { %376 = vrot.lane.b32.xlu0 %v2565_v40, %s2787_s21 }
 0x3f9   :  { %v2567_v42 = vpop.eup %2566 }
 0x3fa   :  { %v367_v43 = vadd.f32 1.0, %v2567_v42 }
 0x3fc   :  { %2568 = vrcp.f32 %v367_v43 }
 0x406   :  { %v2569_v44 = vpop.eup %2568 }
 0x407   :  { %v374_v48 = vmul.f32 %v2569_v44, %v372_v47 }
 0x46a   :  { %v377_v45 = vpop.permute.xlu0 %376 }
 0x46b   :  { %v379_v46 = vmul.f32 %v2569_v44, %v377_v45 }
 0x46d   :  { %381 = vrot.lane.b32.xlu1 %v379_v46, %s2788_s3 }
 0x4df   :  { %v382_v49 = vpop.permute.xlu1 %381 }
 0x4e0   :  { %v384_v50 = vadd.f32 %v382_v49, %v374_v48 }
 0x4e2   :  { %2570 = vtanh.f32 %v384_v50  ;;  %v479_v5 = vrot.slane %v384_v50, 6 }
 0x4ec   :  { %v2571_v51 = vpop.eup %2570 }
 0x4ed   :  { %387 = vrot.lane.b32.xlu0 %v2571_v51, %s2787_s21 }
 0x55f   :  { %v388_v52 = vpop.permute.xlu0 %387 }
 0x560   :  { %v390_v53 = vmul.f32 %v2569_v44, %v388_v52 }
 0x562   :  { %v392_v54 = vrot.slane %v390_v53, 2  ;;  %v1030_v14 = vsel %vm1029_vm3, %v2966_v34, %v390_v53 }
 0x564   :  { %393 = vrot.lane.b32.xlu1 %v392_v54, %s2788_s3 }
 0x5d6   :  { %v394_v55 = vpop.permute.xlu1 %393 }
 0x5d7   :  { %2262 = vmatmul.mubr.msk.f32.vlgmr.msra.gmra.mrb[2].mxu1 %vm186_vm2, %v394_v55 }
 0x5d8   :  { %2459 = vmatpush3.bf16.msra.mxu1 %v2925_v9  ;;  %2283 = vmatprep.mubr.msk.f32.mxu1 %vm2785_vm0, %v2786_v2 }
 0x5d9   :  { %2460 = vmatprep.subr.bf16.mxu1 %v2784_v1 }
 0x5dc   :  { %2462 = vmatpush3.bf16.msra.mxu1 %v2935_v13 }
 0x5dd   :  { %2469 = vmatprep.subr.bf16.mxu1 %v2784_v1 }
 0x6aa   :  { %v463_v56 = vpop.f32.mrb[2].mxu1 }
 0x6ab   :  { %v468_v57 = vrot.slane %v463_v56, 4  ;;  %v2263_v58 = vpop.f32.mrb[3].mxu1 }
 0x6ad   :  { %v470_v59 = vadd.f32 %v468_v57, %v2960_v18 }
 0x6af   :  { %2572 = vtanh.f32 %v470_v59  ;;  %v2096_v61 = vmul.f32 -1.442695, %v470_v59 }
 0x6b1   :  { %2574 = vpow2.f32 %v2096_v61 }
 0x6b9   :  { %v2573_v60 = vpop.eup %2572 }
 0x6ba   :  { %483 = vrot.lane.b32.xlu0 %v2573_v60, %s2787_s21 }
 0x6bb   :  { %v2575_v62 = vpop.eup %2574 }
 0x6bc   :  { %v474_v63 = vadd.f32 1.0, %v2575_v62 }
 0x6be   :  { %2576 = vrcp.f32 %v474_v63 }
 0x6c8   :  { %v2577_v0 = vpop.eup %2576 }
 0x6c9   :  { %v481_v6 = vmul.f32 %v2577_v0, %v479_v5 }
 0x72c   :  { %v484_v3 = vpop.permute.xlu0 %483 }
 0x72d   :  { %v486_v4 = vmul.f32 %v2577_v0, %v484_v3 }
 0x72f   :  { %488 = vrot.lane.b32.xlu1 %v486_v4, %s2788_s3 }
 0x7a1   :  { %v489_v7 = vpop.permute.xlu1 %488 }
 0x7a2   :  { %v491_v8 = vadd.f32 %v489_v7, %v481_v6 }
 0x7a4   :  { %2578 = vtanh.f32 %v491_v8  ;;  %v586_v31 = vrot.slane %v491_v8, 6 }
 0x7ae   :  { %v2579_v10 = vpop.eup %2578 }
 0x7af   :  { %494 = vrot.lane.b32.xlu0 %v2579_v10, %s2787_s21 }
 0x821   :  { %v495_v11 = vpop.permute.xlu0 %494 }
 0x822   :  { %v497_v12 = vmul.f32 %v2577_v0, %v495_v11 }
 0x824   :  { %v499_v15 = vrot.slane %v497_v12, 4  ;;  %v1032_v17 = vsel %vm1031_vm4, %v1030_v14, %v497_v12 }
 0x826   :  { %500 = vrot.lane.b32.xlu1 %v499_v15, %s2788_s3 }
 0x898   :  { %v501_v19 = vpop.permute.xlu1 %500 }
 0x899   :  { %2273 = vmatmul.mubr.msk.f32.vlgmr.msra.gmra.mrb[4].mxu0 %vm186_vm2, %v501_v19 }
 0x89a   :  { %2465 = vmatpush3.bf16.msra.mxu0 %v2925_v9  ;;  %2294 = vmatprep.mubr.msk.f32.mxu0 %vm2785_vm0, %v2786_v2 }
 0x89b   :  { %2466 = vmatprep.subr.bf16.mxu0 %v2784_v1 }
 0x89e   :  { %2468 = vmatpush3.bf16.msra.mxu0 %v2935_v13 }
 0x89f   :  { %2475 = vmatprep.subr.bf16.mxu0 %v2784_v1 }
 0x96c   :  { %v570_v20 = vpop.f32.mrb[4].mxu0 }
 0x96d   :  { %v575_v21 = vrot.slane %v570_v20, 2  ;;  %v2274_v22 = vpop.f32.mrb[5].mxu0 }
 0x96f   :  { %v577_v23 = vadd.f32 %v575_v21, %v2960_v18 }
 0x971   :  { %2580 = vtanh.f32 %v577_v23  ;;  %v2098_v25 = vmul.f32 -1.442695, %v577_v23 }
 0x973   :  { %2582 = vpow2.f32 %v2098_v25 }
 0x97b   :  { %v2581_v24 = vpop.eup %2580 }
 0x97c   :  { %590 = vrot.lane.b32.xlu0 %v2581_v24, %s2787_s21 }
 0x97d   :  { %v2583_v26 = vpop.eup %2582 }
 0x97e   :  { %v581_v27 = vadd.f32 1.0, %v2583_v26 }
 0x980   :  { %2584 = vrcp.f32 %v581_v27 }
 0x98a   :  { %v2585_v28 = vpop.eup %2584 }
 0x98b   :  { %v588_v32 = vmul.f32 %v2585_v28, %v586_v31 }
 0x9ee   :  { %v591_v29 = vpop.permute.xlu0 %590 }
 0x9ef   :  { %v593_v30 = vmul.f32 %v2585_v28, %v591_v29 }
 0x9f1   :  { %595 = vrot.lane.b32.xlu1 %v593_v30, %s2788_s3 }
 0xa63   :  { %v596_v33 = vpop.permute.xlu1 %595 }
 0xa64   :  { %v598_v34 = vadd.f32 %v596_v33, %v588_v32 }
 0xa66   :  { %2586 = vtanh.f32 %v598_v34  ;;  %v690_v50 = vrot.slane %v598_v34, 6 }
 0xa70   :  { %v2587_v18 = vpop.eup %2586 }
 0xa71   :  { %601 = vrot.lane.b32.xlu0 %v2587_v18, %s2787_s21 }
 0xae3   :  { %v602_v35 = vpop.permute.xlu0 %601 }
 0xae4   :  { %v604_v36 = vmul.f32 %v2585_v28, %v602_v35 }
 0xae6   :  { %v606_v37 = vrot.slane %v604_v36, 6  ;;  %v3009_v38 = vsel %vm1033_vm5, %v1032_v17, %v604_v36 }
 0xae8   :  { %607 = vrot.lane.b32.xlu1 %v606_v37, %s2788_s3 }
 0xb5a   :  { %v608_v39 = vpop.permute.xlu1 %607 }
 0xb5b   :  { %2284 = vmatmul.mubr.msk.f32.vlgmr.msra.gmra.mrb[4].mxu1 %vm186_vm2, %v608_v39 }
 0xb5c   :  { %2471 = vmatpush3.bf16.msra.mxu1 %v2925_v9  ;;  %2305 = vmatprep.mubr.msk.f32.mxu1 %vm2785_vm0, %v2786_v2 }
 0xb5d   :  { %2472 = vmatprep.subr.bf16.mxu1 %v2784_v1 }
 0xb60   :  { %2474 = vmatpush3.bf16.msra.mxu1 %v2935_v13 }
 0xc2e   :  { %v677_v40 = vpop.f32.mrb[4].mxu1 }
 0xc2f   :  { %v681_v41 = vadd.f32 %v677_v40, %v2958_v16  ;;  %v2285_v42 = vpop.f32.mrb[5].mxu1 }
 0xc31   :  { %2588 = vtanh.f32 %v681_v41  ;;  %v2100_v44 = vmul.f32 -1.442695, %v681_v41 }
 0xc33   :  { %2590 = vpow2.f32 %v2100_v44 }
 0xc3b   :  { %v2589_v43 = vpop.eup %2588 }
 0xc3c   :  { %694 = vrot.lane.b32.xlu0 %v2589_v43, %s2787_s21 }
 0xc3d   :  { %v2591_v45 = vpop.eup %2590 }
 0xc3e   :  { %v685_v46 = vadd.f32 1.0, %v2591_v45 }
 0xc40   :  { %2592 = vrcp.f32 %v685_v46 }
 0xc4a   :  { %v2593_v47 = vpop.eup %2592 }
 0xc4b   :  { %v692_v51 = vmul.f32 %v2593_v47, %v690_v50 }
 0xcae   :  { %v695_v48 = vpop.permute.xlu0 %694 }
 0xcaf   :  { %v697_v49 = vmul.f32 %v2593_v47, %v695_v48 }
 0xcb1   :  { %699 = vrot.lane.b32.xlu1 %v697_v49, %s2788_s3 }
 0xd23   :  { %v700_v52 = vpop.permute.xlu1 %699 }
 0xd24   :  { %v702_v53 = vadd.f32 %v700_v52, %v692_v51 }
 0xd26   :  { %2594 = vtanh.f32 %v702_v53 }
 0xd30   :  { %v2595_v54 = vpop.eup %2594 }
 0xd31   :  { %705 = vrot.lane.b32.xlu0 %v2595_v54, %s2787_s21 }
 0xda3   :  { %v706_v55 = vpop.permute.xlu0 %705 }
 0xda4   :  { %v3022_v56 = vmul.f32 %v2593_v47, %v706_v55  ;;  %v1038_v55 = vld [vmem:[#allocation7] sm:$0xff] }
 0xda6   :  { %710 = vrot.lane.b32.xlu1 %v3022_v56, %s2788_s3 }
 0xe18   :  { %v711_v57 = vpop.permute.xlu1 %710 }
 0xe19   :  { %2295 = vmatmul.mubr.msk.f32.vlgmr.msra.gmra.mrb[6].mxu0 %vm186_vm2, %v711_v57  ;;  %v1134_v57 = vld [vmem:[#allocation8] sm:$0xff] }
 0xe1a   :  { %2477 = vmatpush3.bf16.msra.mxu0 %v2925_v9  ;;  %2316 = vmatprep.mubr.msk.f32.mxu0 %vm2785_vm0, %v2786_v2 }
 0xe1b   :  { %2478 = vmatprep.subr.bf16.mxu0 %v2784_v1 }
 0xe1e   :  { %2480 = vmatpush3.bf16.msra.mxu0 %v2935_v13  ;;  %v796_v13 = vrot.slane %v702_v53, 6 }
 0xe1f   :  { %2489 = vmatprep.subr.bf16.mxu0 %v2784_v1 }
 0xeec   :  { %v780_v58 = vpop.f32.mrb[6].mxu0 }
 0xeed   :  { %v785_v59 = vrot.slane %v780_v58, 6  ;;  %v2296_v60 = vpop.f32.mrb[7].mxu0 }
 0xeee   :  { %v1040_v60 = vld [vmem:[#allocation7 + $0x10] sm:$0xff] }
 0xeef   :  { %v787_v61 = vadd.f32 %v785_v59, %v2958_v16  ;;  %v1135_v59 = vld [vmem:[#allocation8 + $0x8] sm:$0xff] }
 0xef1   :  { %2596 = vtanh.f32 %v787_v61  ;;  %v2102_v63 = vmul.f32 -1.442695, %v787_v61  ;;  %v1041_v61 = vld [vmem:[#allocation7 + $0x18] sm:$0xff] }
 0xef3   :  { %2598 = vpow2.f32 %v2102_v63  ;;  %v2485_v63 = vpack.c.bf16 %v1041_v61, %v1040_v60 }
 0xefb   :  { %v2597_v62 = vpop.eup %2596 }
 0xefc   :  { %800 = vrot.lane.b32.xlu0 %v2597_v62, %s2787_s21  ;;  %v3056_v62 = vpack.c.bf16 %v1135_v59, %v1134_v57 }
 0xefd   :  { %v2599_v9 = vpop.eup %2598 }
 0xefe   :  { %v791_v0 = vadd.f32 1.0, %v2599_v9  ;;  %v1136_v9 = vld [vmem:[#allocation8 + $0x10] sm:$0xff] }
 0xf00   :  { %2600 = vrcp.f32 %v791_v0 }
 0xf0a   :  { %v2601_v3 = vpop.eup %2600 }
 0xf0b   :  { %v798_v6 = vmul.f32 %v2601_v3, %v796_v13 }
 0xf6e   :  { %v801_v4 = vpop.permute.xlu0 %800 }
 0xf6f   :  { %v803_v5 = vmul.f32 %v2601_v3, %v801_v4 }
 0xf71   :  { %805 = vrot.lane.b32.xlu1 %v803_v5, %s2788_s3 }
 0xfe3   :  { %v806_v7 = vpop.permute.xlu1 %805 }
 0xfe4   :  { %v808_v8 = vadd.f32 %v806_v7, %v798_v6 }
 0xfe6   :  { %2602 = vtanh.f32 %v808_v8  ;;  %v903_v29 = vrot.slane %v808_v8, 6 }
 0xff0   :  { %v2603_v10 = vpop.eup %2602 }
 0xff1   :  { %811 = vrot.lane.b32.xlu0 %v2603_v10, %s2787_s21  ;;  %v2107_v10 = vld [vmem:[%s3208_s6] ss:$0 sm:$0xff] }
0x1063   :  { %v812_v11 = vpop.permute.xlu0 %811 }
0x1064   :  { %v814_v12 = vmul.f32 %v2601_v3, %v812_v11 }
0x1066   :  { %v816_v14 = vrot.slane %v814_v12, 2  ;;  %v1035_v35 = vsel %vm1029_vm3, %v3022_v56, %v814_v12  ;;  %v1039_v56 = vld [vmem:[#allocation7 + $0x8] sm:$0xff] }
0x1067   :  { %v2481_v58 = vpack.c.bf16 %v1039_v56, %v1038_v55 }
0x1068   :  { %817 = vrot.lane.b32.xlu1 %v816_v14, %s2788_s3 }
0x1069   :  { %2482 = vmatprep.subr.bf16.mxu1 %v2481_v58 }
0x10da   :  { %v818_v15 = vpop.permute.xlu1 %817 }
0x10db   :  { %2306 = vmatmul.mubr.msk.f32.vlgmr.msra.gmra.mrb[6].mxu1 %vm186_vm2, %v818_v15 }
0x10dc   :  { %2484 = vmatpush3.bf16.msra.mxu1 %v2481_v58 }
0x10dd   :  { %2486 = vmatprep.subr.bf16.mxu1 %v2485_v63 }
0x10e0   :  { %2488 = vmatpush3.bf16.msra.mxu1 %v2485_v63 }
0x10e1   :  { %2495 = vmatprep.subr.bf16.mxu1 %v2784_v1 }
0x11ae   :  { %v887_v17 = vpop.f32.mrb[6].mxu1 }
0x11af   :  { %v892_v19 = vrot.slane %v887_v17, 4  ;;  %v2307_v20 = vpop.f32.mrb[7].mxu1 }
0x11b1   :  { %v894_v21 = vadd.f32 %v892_v19, %v2958_v16 }
0x11b3   :  { %2604 = vtanh.f32 %v894_v21  ;;  %v2104_v23 = vmul.f32 -1.442695, %v894_v21 }
0x11b5   :  { %2606 = vpow2.f32 %v2104_v23 }
0x11bd   :  { %v2605_v22 = vpop.eup %2604 }
0x11be   :  { %907 = vrot.lane.b32.xlu0 %v2605_v22, %s2787_s21 }
0x11bf   :  { %v2607_v24 = vpop.eup %2606 }
0x11c0   :  { %v898_v25 = vadd.f32 1.0, %v2607_v24 }
0x11c2   :  { %2608 = vrcp.f32 %v898_v25 }
0x11cc   :  { %v2609_v26 = vpop.eup %2608 }
0x11cd   :  { %v905_v30 = vmul.f32 %v2609_v26, %v903_v29 }
0x1230   :  { %v908_v27 = vpop.permute.xlu0 %907 }
0x1231   :  { %v910_v28 = vmul.f32 %v2609_v26, %v908_v27 }
0x1233   :  { %912 = vrot.lane.b32.xlu1 %v910_v28, %s2788_s3 }
0x12a5   :  { %v913_v31 = vpop.permute.xlu1 %912 }
0x12a6   :  { %v915_v32 = vadd.f32 %v913_v31, %v905_v30 }
0x12a8   :  { %2610 = vtanh.f32 %v915_v32  ;;  %v1010_v51 = vrot.slane %v915_v32, 6 }
0x12b2   :  { %v2611_v33 = vpop.eup %2610 }
0x12b3   :  { %918 = vrot.lane.b32.xlu0 %v2611_v33, %s2787_s21 }
0x1325   :  { %v919_v34 = vpop.permute.xlu0 %918 }
0x1326   :  { %v921_v18 = vmul.f32 %v2609_v26, %v919_v34 }
0x1328   :  { %v923_v36 = vrot.slane %v921_v18, 4  ;;  %v1036_v37 = vsel %vm1031_vm4, %v1035_v35, %v921_v18 }
0x132a   :  { %924 = vrot.lane.b32.xlu1 %v923_v36, %s2788_s3 }
0x139c   :  { %v925_v39 = vpop.permute.xlu1 %924 }
0x139d   :  { %2317 = vmatmul.mubr.msk.f32.vlgmr.msra.gmra.mrb[8].mxu0 %vm186_vm2, %v925_v39 }
0x139e   :  { %2338 = vmatprep.mubr.msk.f32.mxu0 %vm2785_vm0, %v2786_v2  ;;  %2491 = vmatpush3.bf16.msra.mxu0 %v3056_v62 }
0x139f   :  { %2492 = vmatprep.subr.bf16.mxu0 %v2784_v1 }
0x1470   :  { %v994_v40 = vpop.f32.mrb[8].mxu0 }
0x1471   :  { %v999_v41 = vrot.slane %v994_v40, 2  ;;  %v2318_v42 = vpop.f32.mrb[9].mxu0 }
0x1473   :  { %v1001_v43 = vadd.f32 %v999_v41, %v2958_v16 }
0x1475   :  { %2612 = vtanh.f32 %v1001_v43  ;;  %v2106_v45 = vmul.f32 -1.442695, %v1001_v43 }
0x1477   :  { %2614 = vpow2.f32 %v2106_v45 }
0x147f   :  { %v2613_v44 = vpop.eup %2612 }
0x1480   :  { %1014 = vrot.lane.b32.xlu0 %v2613_v44, %s2787_s21 }
0x1481   :  { %v2615_v46 = vpop.eup %2614 }
0x1482   :  { %v1005_v47 = vadd.f32 1.0, %v2615_v46 }
0x1484   :  { %2616 = vrcp.f32 %v1005_v47 }
0x148e   :  { %v2617_v48 = vpop.eup %2616 }
0x148f   :  { %v1012_v52 = vmul.f32 %v2617_v48, %v1010_v51 }
0x14f2   :  { %v1015_v49 = vpop.permute.xlu0 %1014 }
0x14f3   :  { %v1017_v50 = vmul.f32 %v2617_v48, %v1015_v49 }
0x14f5   :  { %1019 = vrot.lane.b32.xlu1 %v1017_v50, %s2788_s3 }
0x14f9   :  { %1051 = vrot.lane.b32.xlu1 %v3009_v38, %s2788_s3  ;;  %v1137_v38 = vld [vmem:[#allocation8 + $0x18] sm:$0xff] }
0x14fa   :  { %v3059_v0 = vpack.c.bf16 %v1137_v38, %v1136_v9 }
0x14fc   :  { %2494 = vmatpush3.bf16.msra.mxu0 %v3059_v0 }
0x14fd   :  { %2501 = vmatprep.subr.bf16.mxu0 %v2784_v1 }
0x14ff   :  { %2339 = vmatmul.mubr.f32.vlgmr.msra.gmra.mrb[10].mxu0 %v2786_v2 }
0x1500   :  { %2503 = vmatpush3.bf16.msra.mxu0 %v3056_v62  ;;  %2360 = vmatprep.mubr.msk.f32.mxu0 %vm2785_vm0, %v2786_v2 }
0x1501   :  { %2504 = vmatprep.subr.bf16.mxu0 %v2784_v1 }
0x1504   :  { %2506 = vmatpush3.bf16.msra.mxu0 %v3059_v0 }
0x1505   :  { %2513 = vmatprep.subr.bf16.mxu0 %v2784_v1 }
0x1567   :  { %v1020_v16 = vpop.permute.xlu1 %1019 }
0x1568   :  { %v1022_v53 = vadd.f32 %v1020_v16, %v1012_v52 }
0x156a   :  { %2618 = vtanh.f32 %v1022_v53 }
0x156b   :  { %v1052_v54 = vpop.permute.xlu1 %1051 }
0x156c   :  { %2327 = vmatprep.mubr.msk.f32.mxu1 %vm186_vm2, %v1052_v54 }
0x1574   :  { %v2619_v3 = vpop.eup %2618 }
0x1575   :  { %1025 = vrot.lane.b32.xlu0 %v2619_v3, %s2787_s21 }
0x15d2   :  { %v1204_v7 = vpop.f32.mrb[10].mxu0 }
0x15d3   :  { %v2340_v8 = vpop.f32.mrb[11].mxu0 }
0x15e7   :  { %v1026_v4 = vpop.permute.xlu0 %1025 }
0x15e8   :  { %v1028_v5 = vmul.f32 %v2617_v48, %v1026_v4 }
0x15ea   :  { %v1037_v13 = vsel %vm1033_vm5, %v1036_v37, %v1028_v5 }
0x15eb   :  { %1053 = vrot.lane.b32.xlu0 %v1037_v13, %s2788_s3 }
0x165d   :  { %v1054_v6 = vpop.permute.xlu0 %1053 }
0x165e   :  { %2328 = vmatmul.mubr.msk.f32.vlgmr.msra.gmra.mrb[8].mxu1 %vm186_vm2, %v1054_v6 }
0x165f   :  { %2497 = vmatpush3.bf16.msra.mxu1 %v3056_v62  ;;  %2349 = vmatprep.mubr.msk.f32.mxu1 %vm2785_vm0, %v2786_v2 }
0x1660   :  { %2498 = vmatprep.subr.bf16.mxu1 %v2784_v1 }
0x1663   :  { %2500 = vmatpush3.bf16.msra.mxu1 %v3059_v0 }
0x1664   :  { %2507 = vmatprep.subr.bf16.mxu1 %v2784_v1 }
0x1731   :  { %v2329_v11 = vpop.f32.mrb[8].mxu1 }
0x1732   :  { %v3085_v12 = vadd.f32 %v2329_v11, %v2107_v10  ;;  %v1125_v14 = vpop.f32.mrb[9].mxu1 }
0x1733   :  { %v3087_v15 = vadd.f32 %v2107_v10, %v1125_v14 }
0x1735   :  { %v1208_v17 = vadd.f32 %v1204_v7, %v3087_v15 }
0x1737   :  { %2620 = vtanh.f32 %v1208_v17  ;;  %v2110_v20 = vmul.f32 -1.442695, %v1208_v17 }
0x1739   :  { %2622 = vpow2.f32 %v2110_v20 }
0x1741   :  { %v2621_v19 = vpop.eup %2620 }
0x1742   :  { %1218 = vrot.lane.b32.xlu1 %v2621_v19, %s2787_s21 }
0x1743   :  { %v2623_v21 = vpop.eup %2622 }
0x1744   :  { %v1212_v22 = vadd.f32 1.0, %v2623_v21 }
0x1746   :  { %2624 = vrcp.f32 %v1212_v22 }
0x1750   :  { %v2625_v23 = vpop.eup %2624 }
0x1751   :  { %v1216_v26 = vmul.f32 0.0, %v2625_v23 }
0x17b4   :  { %v1219_v24 = vpop.permute.xlu1 %1218 }
0x17b5   :  { %v1221_v25 = vmul.f32 %v2625_v23, %v1219_v24 }
0x17b7   :  { %1223 = vrot.lane.b32.xlu0 %v1221_v25, %s2788_s3 }
0x1829   :  { %v1224_v27 = vpop.permute.xlu0 %1223 }
0x182a   :  { %v1226_v28 = vadd.f32 %v1224_v27, %v1216_v26 }
0x182c   :  { %2626 = vtanh.f32 %v1226_v28  ;;  %v1320_v44 = vrot.slane %v1226_v28, 6 }
0x1836   :  { %v2627_v29 = vpop.eup %2626 }
0x1837   :  { %1229 = vrot.lane.b32.xlu1 %v2627_v29, %s2787_s21 }
0x18a9   :  { %v1230_v30 = vpop.permute.xlu1 %1229 }
0x18aa   :  { %v3093_v31 = vmul.f32 %v2625_v23, %v1230_v30 }
0x18ac   :  { %1234 = vrot.lane.b32.xlu0 %v3093_v31, %s2788_s3 }
0x191e   :  { %v1235_v32 = vpop.permute.xlu0 %1234 }
0x191f   :  { %2350 = vmatmul.mubr.msk.f32.vlgmr.msra.gmra.mrb[10].mxu1 %vm186_vm2, %v1235_v32 }
0x1920   :  { %2509 = vmatpush3.bf16.msra.mxu1 %v3056_v62  ;;  %2371 = vmatprep.mubr.msk.f32.mxu1 %vm2785_vm0, %v2786_v2 }
0x1921   :  { %2510 = vmatprep.subr.bf16.mxu1 %v2784_v1 }
0x1924   :  { %2512 = vmatpush3.bf16.msra.mxu1 %v3059_v0 }
0x1925   :  { %2519 = vmatprep.subr.bf16.mxu1 %v2784_v1 }
0x19f2   :  { %v1304_v33 = vpop.f32.mrb[10].mxu1 }
0x19f3   :  { %v1309_v34 = vrot.slane %v1304_v33, 6  ;;  %v2351_v18 = vpop.f32.mrb[11].mxu1 }
0x19f5   :  { %v1311_v35 = vadd.f32 %v1309_v34, %v3087_v15 }
0x19f7   :  { %2628 = vtanh.f32 %v1311_v35  ;;  %v2112_v37 = vmul.f32 -1.442695, %v1311_v35 }
0x19f9   :  { %2630 = vpow2.f32 %v2112_v37 }
0x1a01   :  { %v2629_v36 = vpop.eup %2628 }
0x1a02   :  { %1324 = vrot.lane.b32.xlu1 %v2629_v36, %s2787_s21 }
0x1a03   :  { %v2631_v39 = vpop.eup %2630 }
0x1a04   :  { %v1315_v40 = vadd.f32 1.0, %v2631_v39 }
0x1a06   :  { %2632 = vrcp.f32 %v1315_v40 }
0x1a10   :  { %v2633_v41 = vpop.eup %2632 }
0x1a11   :  { %v1322_v45 = vmul.f32 %v2633_v41, %v1320_v44 }
0x1a74   :  { %v1325_v42 = vpop.permute.xlu1 %1324 }
0x1a75   :  { %v1327_v43 = vmul.f32 %v2633_v41, %v1325_v42 }
0x1a77   :  { %1329 = vrot.lane.b32.xlu0 %v1327_v43, %s2788_s3 }
0x1ae9   :  { %v1330_v46 = vpop.permute.xlu0 %1329 }
0x1aea   :  { %v1332_v47 = vadd.f32 %v1330_v46, %v1322_v45 }
0x1aec   :  { %2634 = vtanh.f32 %v1332_v47  ;;  %v1427_v9 = vrot.slane %v1332_v47, 6 }
0x1af6   :  { %v2635_v48 = vpop.eup %2634 }
0x1af7   :  { %1335 = vrot.lane.b32.xlu1 %v2635_v48, %s2787_s21 }
0x1b69   :  { %v1336_v49 = vpop.permute.xlu1 %1335 }
0x1b6a   :  { %v1338_v50 = vmul.f32 %v2633_v41, %v1336_v49 }
0x1b6c   :  { %v1340_v51 = vrot.slane %v1338_v50, 2  ;;  %v1977_v7 = vsel %vm1029_vm3, %v3093_v31, %v1338_v50 }
0x1b6e   :  { %1341 = vrot.lane.b32.xlu0 %v1340_v51, %s2788_s3 }
0x1be0   :  { %v1342_v52 = vpop.permute.xlu0 %1341 }
0x1be1   :  { %2361 = vmatmul.mubr.msk.f32.vlgmr.msra.gmra.mrb[12].mxu0 %vm186_vm2, %v1342_v52 }
0x1be2   :  { %2515 = vmatpush3.bf16.msra.mxu0 %v3056_v62  ;;  %2382 = vmatprep.mubr.msk.f32.mxu0 %vm2785_vm0, %v2786_v2 }
0x1be3   :  { %2516 = vmatprep.subr.bf16.mxu0 %v2784_v1 }
0x1be6   :  { %2518 = vmatpush3.bf16.msra.mxu0 %v3059_v0 }
0x1be7   :  { %2525 = vmatprep.subr.bf16.mxu0 %v2784_v1 }
0x1cb4   :  { %v1411_v16 = vpop.f32.mrb[12].mxu0 }
0x1cb5   :  { %v1416_v53 = vrot.slane %v1411_v16, 4  ;;  %v2362_v54 = vpop.f32.mrb[13].mxu0 }
0x1cb7   :  { %v1418_v55 = vadd.f32 %v1416_v53, %v3087_v15 }
0x1cb9   :  { %2636 = vtanh.f32 %v1418_v55  ;;  %v2114_v57 = vmul.f32 -1.442695, %v1418_v55 }
0x1cbb   :  { %2638 = vpow2.f32 %v2114_v57 }
0x1cc3   :  { %v2637_v56 = vpop.eup %2636 }
0x1cc4   :  { %1431 = vrot.lane.b32.xlu1 %v2637_v56, %s2787_s21 }
0x1cc5   :  { %v2639_v58 = vpop.eup %2638 }
0x1cc6   :  { %v1422_v59 = vadd.f32 1.0, %v2639_v58 }
0x1cc8   :  { %2640 = vrcp.f32 %v1422_v59 }
0x1cd2   :  { %v2641_v60 = vpop.eup %2640 }
0x1cd3   :  { %v1429_v38 = vmul.f32 %v2641_v60, %v1427_v9 }
0x1d36   :  { %v1432_v61 = vpop.permute.xlu1 %1431 }
0x1d37   :  { %v1434_v63 = vmul.f32 %v2641_v60, %v1432_v61 }
0x1d39   :  { %1436 = vrot.lane.b32.xlu0 %v1434_v63, %s2788_s3 }
0x1dab   :  { %v1437_v3 = vpop.permute.xlu0 %1436 }
0x1dac   :  { %v1439_v4 = vadd.f32 %v1437_v3, %v1429_v38 }
0x1dae   :  { %2642 = vtanh.f32 %v1439_v4  ;;  %v1534_v28 = vrot.slane %v1439_v4, 6 }
0x1db8   :  { %v2643_v5 = vpop.eup %2642 }
0x1db9   :  { %1442 = vrot.lane.b32.xlu1 %v2643_v5, %s2787_s21 }
0x1e2b   :  { %v1443_v13 = vpop.permute.xlu1 %1442 }
0x1e2c   :  { %v1445_v6 = vmul.f32 %v2641_v60, %v1443_v13 }
0x1e2e   :  { %v1447_v8 = vrot.slane %v1445_v6, 4  ;;  %v1978_v10 = vsel %vm1031_vm4, %v1977_v7, %v1445_v6 }
0x1e30   :  { %1448 = vrot.lane.b32.xlu0 %v1447_v8, %s2788_s3 }
0x1ea2   :  { %v1449_v11 = vpop.permute.xlu0 %1448 }
0x1ea3   :  { %2372 = vmatmul.mubr.msk.f32.vlgmr.msra.gmra.mrb[12].mxu1 %vm186_vm2, %v1449_v11 }
0x1ea4   :  { %2521 = vmatpush3.bf16.msra.mxu1 %v3056_v62  ;;  %2393 = vmatprep.mubr.msk.f32.mxu1 %vm2785_vm0, %v2786_v2 }
0x1ea5   :  { %2522 = vmatprep.subr.bf16.mxu1 %v2784_v1 }
0x1ea8   :  { %2524 = vmatpush3.bf16.msra.mxu1 %v3059_v0 }
0x1ea9   :  { %2531 = vmatprep.subr.bf16.mxu1 %v2784_v1 }
0x1f76   :  { %v1518_v14 = vpop.f32.mrb[12].mxu1 }
0x1f77   :  { %v1523_v17 = vrot.slane %v1518_v14, 2  ;;  %v2373_v19 = vpop.f32.mrb[13].mxu1 }
0x1f79   :  { %v1525_v20 = vadd.f32 %v1523_v17, %v3087_v15 }
0x1f7b   :  { %2644 = vtanh.f32 %v1525_v20  ;;  %v2116_v22 = vmul.f32 -1.442695, %v1525_v20 }
0x1f7d   :  { %2646 = vpow2.f32 %v2116_v22 }
0x1f85   :  { %v2645_v21 = vpop.eup %2644 }
0x1f86   :  { %1538 = vrot.lane.b32.xlu1 %v2645_v21, %s2787_s21 }
0x1f87   :  { %v2647_v23 = vpop.eup %2646 }
0x1f88   :  { %v1529_v24 = vadd.f32 1.0, %v2647_v23 }
0x1f8a   :  { %2648 = vrcp.f32 %v1529_v24 }
0x1f94   :  { %v2649_v25 = vpop.eup %2648 }
0x1f95   :  { %v1536_v29 = vmul.f32 %v2649_v25, %v1534_v28 }
0x1ff8   :  { %v1539_v26 = vpop.permute.xlu1 %1538 }
0x1ff9   :  { %v1541_v27 = vmul.f32 %v2649_v25, %v1539_v26 }
0x1ffb   :  { %1543 = vrot.lane.b32.xlu0 %v1541_v27, %s2788_s3 }
0x206d   :  { %v1544_v30 = vpop.permute.xlu0 %1543 }
0x206e   :  { %v1546_v31 = vadd.f32 %v1544_v30, %v1536_v29 }
0x2070   :  { %2650 = vtanh.f32 %v1546_v31  ;;  %v1638_v47 = vrot.slane %v1546_v31, 6 }
0x207a   :  { %v2651_v15 = vpop.eup %2650 }
0x207b   :  { %1549 = vrot.lane.b32.xlu1 %v2651_v15, %s2787_s21 }
0x20ed   :  { %v1550_v32 = vpop.permute.xlu1 %1549 }
0x20ee   :  { %v1552_v33 = vmul.f32 %v2649_v25, %v1550_v32 }
0x20f0   :  { %v1554_v34 = vrot.slane %v1552_v33, 6  ;;  %v3136_v18 = vsel %vm1033_vm5, %v1978_v10, %v1552_v33 }
0x20f2   :  { %1555 = vrot.lane.b32.xlu0 %v1554_v34, %s2788_s3 }
0x2164   :  { %v1556_v35 = vpop.permute.xlu0 %1555 }
0x2165   :  { %2383 = vmatmul.mubr.msk.f32.vlgmr.msra.gmra.mrb[14].mxu0 %vm186_vm2, %v1556_v35 }
0x2166   :  { %2527 = vmatpush3.bf16.msra.mxu0 %v3056_v62  ;;  %2404 = vmatprep.mubr.msk.f32.mxu0 %vm2785_vm0, %v2786_v2 }
0x2167   :  { %2528 = vmatprep.subr.bf16.mxu0 %v2784_v1 }
0x216a   :  { %2530 = vmatpush3.bf16.msra.mxu0 %v3059_v0 }
0x2238   :  { %v1625_v36 = vpop.f32.mrb[14].mxu0 }
0x2239   :  { %v1629_v37 = vadd.f32 %v1625_v36, %v3085_v12  ;;  %v2384_v39 = vpop.f32.mrb[15].mxu0 }
0x223b   :  { %2652 = vtanh.f32 %v1629_v37  ;;  %v2118_v41 = vmul.f32 -1.442695, %v1629_v37 }
0x223d   :  { %2654 = vpow2.f32 %v2118_v41 }
0x2245   :  { %v2653_v40 = vpop.eup %2652 }
0x2246   :  { %1642 = vrot.lane.b32.xlu1 %v2653_v40, %s2787_s21 }
0x2247   :  { %v2655_v42 = vpop.eup %2654 }
0x2248   :  { %v1633_v43 = vadd.f32 1.0, %v2655_v42 }
0x224a   :  { %2656 = vrcp.f32 %v1633_v43 }
0x2254   :  { %v2657_v44 = vpop.eup %2656 }
0x2255   :  { %v1640_v48 = vmul.f32 %v2657_v44, %v1638_v47 }
0x22b8   :  { %v1643_v45 = vpop.permute.xlu1 %1642 }
0x22b9   :  { %v1645_v46 = vmul.f32 %v2657_v44, %v1643_v45 }
0x22bb   :  { %1647 = vrot.lane.b32.xlu0 %v1645_v46, %s2788_s3 }
0x232d   :  { %v1648_v49 = vpop.permute.xlu0 %1647 }
0x232e   :  { %v1650_v50 = vadd.f32 %v1648_v49, %v1640_v48 }
0x2330   :  { %2658 = vtanh.f32 %v1650_v50 }
0x233a   :  { %v2659_v51 = vpop.eup %2658 }
0x233b   :  { %1653 = vrot.lane.b32.xlu1 %v2659_v51, %s2787_s21  ;;  %v1984_v51 = vld [vmem:[%s3209_s7 + $0x8] sm:$0xff] }
0x23ad   :  { %v1654_v52 = vpop.permute.xlu1 %1653 }
0x23ae   :  { %v3149_v16 = vmul.f32 %v2657_v44, %v1654_v52  ;;  %v1985_v52 = vld [vmem:[%s3209_s7 + $0x10] sm:$0xff] }
0x23b0   :  { %1658 = vrot.lane.b32.xlu0 %v3149_v16, %s2788_s3 }
0x2422   :  { %v1659_v53 = vpop.permute.xlu0 %1658 }
0x2423   :  { %2394 = vmatmul.mubr.msk.f32.vlgmr.msra.gmra.mrb[14].mxu1 %vm186_vm2, %v1659_v53 }
0x2424   :  { %2533 = vmatpush3.bf16.msra.mxu1 %v3056_v62  ;;  %2415 = vmatprep.mubr.msk.f32.mxu1 %vm2785_vm0, %v2786_v2 }
0x2425   :  { %2534 = vmatprep.subr.bf16.mxu1 %v2784_v1  ;;  %v1744_v1 = vrot.slane %v1650_v50, 6  ;;  %v1983_v50 = vld [vmem:[%s3209_s7] sm:$0xff] }
0x2428   :  { %2536 = vmatpush3.bf16.msra.mxu1 %v3059_v0 }
0x24f6   :  { %v1728_v54 = vpop.f32.mrb[14].mxu1 }
0x24f7   :  { %v1733_v55 = vrot.slane %v1728_v54, 6  ;;  %v2395_v56 = vpop.f32.mrb[15].mxu1 }
0x24f9   :  { %v1735_v57 = vadd.f32 %v1733_v55, %v3085_v12 }
0x24fb   :  { %2660 = vtanh.f32 %v1735_v57  ;;  %v2120_v59 = vmul.f32 -1.442695, %v1735_v57 }
0x24fd   :  { %2662 = vpow2.f32 %v2120_v59  ;;  %v2125_v59 = vld [vmem:[#allocation2] ss:$0 sm:$0xff] }
0x2505   :  { %v2661_v58 = vpop.eup %2660 }
0x2506   :  { %1748 = vrot.lane.b32.xlu1 %v2661_v58, %s2787_s21 }
0x2507   :  { %v2663_v60 = vpop.eup %2662 }
0x2508   :  { %v1739_v62 = vadd.f32 1.0, %v2663_v60 }
0x250a   :  { %2664 = vrcp.f32 %v1739_v62 }
0x2514   :  { %v2665_v61 = vpop.eup %2664 }
0x2515   :  { %v1746_v0 = vmul.f32 %v2665_v61, %v1744_v1 }
0x2578   :  { %v1749_v2 = vpop.permute.xlu1 %1748 }
0x2579   :  { %v1751_v63 = vmul.f32 %v2665_v61, %v1749_v2 }
0x257b   :  { %1753 = vrot.lane.b32.xlu0 %v1751_v63, %s2788_s3 }
0x25ed   :  { %v1754_v9 = vpop.permute.xlu0 %1753 }
0x25ee   :  { %v1756_v38 = vadd.f32 %v1754_v9, %v1746_v0 }
0x25f0   :  { %2666 = vtanh.f32 %v1756_v38  ;;  %v1851_v24 = vrot.slane %v1756_v38, 6 }
0x25fa   :  { %v2667_v3 = vpop.eup %2666 }
0x25fb   :  { %1759 = vrot.lane.b32.xlu1 %v2667_v3, %s2787_s21 }
0x266d   :  { %v1760_v4 = vpop.permute.xlu1 %1759 }
0x266e   :  { %v1762_v5 = vmul.f32 %v2665_v61, %v1760_v4 }
0x2670   :  { %v1764_v13 = vrot.slane %v1762_v5, 2  ;;  %v1980_v31 = vsel %vm1029_vm3, %v3149_v16, %v1762_v5  ;;  %v1986_v16 = vld [vmem:[%s3209_s7 + $0x18] sm:$0xff] }
0x2671   :  { %v2541_v53 = vpack.c.bf16 %v1986_v16, %v1985_v52 }
0x2672   :  { %1765 = vrot.lane.b32.xlu0 %v1764_v13, %s2788_s3 }
0x26e4   :  { %v1766_v6 = vpop.permute.xlu0 %1765 }
0x26e5   :  { %2405 = vmatmul.mubr.msk.f32.vlgmr.msra.gmra.mrb[16].mxu0 %vm186_vm2, %v1766_v6 }
0x27b8   :  { %v1835_v7 = vpop.f32.mrb[16].mxu0 }
0x27b9   :  { %v1840_v8 = vrot.slane %v1835_v7, 4  ;;  %v2406_v10 = vpop.f32.mrb[17].mxu0 }
0x27bb   :  { %v1842_v11 = vadd.f32 %v1840_v8, %v3085_v12 }
0x27bd   :  { %2668 = vtanh.f32 %v1842_v11  ;;  %v2122_v17 = vmul.f32 -1.442695, %v1842_v11 }
0x27bf   :  { %2670 = vpow2.f32 %v2122_v17 }
0x27c7   :  { %v2669_v14 = vpop.eup %2668 }
0x27c8   :  { %1855 = vrot.lane.b32.xlu1 %v2669_v14, %s2787_s21 }
0x27c9   :  { %v2671_v19 = vpop.eup %2670 }
0x27ca   :  { %v1846_v20 = vadd.f32 1.0, %v2671_v19 }
0x27cc   :  { %2672 = vrcp.f32 %v1846_v20 }
0x27d6   :  { %v2673_v21 = vpop.eup %2672 }
0x27d7   :  { %v1853_v25 = vmul.f32 %v2673_v21, %v1851_v24 }
0x283a   :  { %v1856_v22 = vpop.permute.xlu1 %1855 }
0x283b   :  { %v1858_v23 = vmul.f32 %v2673_v21, %v1856_v22 }
0x283d   :  { %1860 = vrot.lane.b32.xlu0 %v1858_v23, %s2788_s3 }
0x28af   :  { %v1861_v26 = vpop.permute.xlu0 %1860 }
0x28b0   :  { %v1863_v27 = vadd.f32 %v1861_v26, %v1853_v25 }
0x28b2   :  { %2674 = vtanh.f32 %v1863_v27  ;;  %v1958_v46 = vrot.slane %v1863_v27, 6 }
0x28bc   :  { %v2675_v28 = vpop.eup %2674 }
0x28bd   :  { %1866 = vrot.lane.b32.xlu1 %v2675_v28, %s2787_s21 }
0x292f   :  { %v1867_v29 = vpop.permute.xlu1 %1866 }
0x2930   :  { %v1869_v30 = vmul.f32 %v2673_v21, %v1867_v29 }
0x2932   :  { %v1871_v15 = vrot.slane %v1869_v30, 4  ;;  %v1981_v32 = vsel %vm1031_vm4, %v1980_v31, %v1869_v30 }
0x2934   :  { %1872 = vrot.lane.b32.xlu0 %v1871_v15, %s2788_s3 }
0x29a6   :  { %v1873_v33 = vpop.permute.xlu0 %1872 }
0x29a7   :  { %2416 = vmatmul.mubr.msk.f32.vlgmr.msra.gmra.mrb[16].mxu1 %vm186_vm2, %v1873_v33 }
0x2a7a   :  { %v1942_v34 = vpop.f32.mrb[16].mxu1 }
0x2a7b   :  { %v1947_v35 = vrot.slane %v1942_v34, 2  ;;  %v2417_v36 = vpop.f32.mrb[17].mxu1 }
0x2a7d   :  { %v1949_v37 = vadd.f32 %v1947_v35, %v3085_v12 }
0x2a7f   :  { %2676 = vtanh.f32 %v1949_v37  ;;  %v2124_v40 = vmul.f32 -1.442695, %v1949_v37 }
0x2a81   :  { %2678 = vpow2.f32 %v2124_v40 }
0x2a89   :  { %v2677_v39 = vpop.eup %2676 }
0x2a8a   :  { %1962 = vrot.lane.b32.xlu1 %v2677_v39, %s2787_s21 }
0x2a8b   :  { %v2679_v41 = vpop.eup %2678 }
0x2a8c   :  { %v1953_v42 = vadd.f32 1.0, %v2679_v41 }
0x2a8e   :  { %2680 = vrcp.f32 %v1953_v42 }
0x2a98   :  { %v2681_v43 = vpop.eup %2680 }
0x2a99   :  { %v1960_v47 = vmul.f32 %v2681_v43, %v1958_v46 }
0x2afc   :  { %v1963_v44 = vpop.permute.xlu1 %1962 }
0x2afd   :  { %v1965_v45 = vmul.f32 %v2681_v43, %v1963_v44 }
0x2aff   :  { %1967 = vrot.lane.b32.xlu0 %v1965_v45, %s2788_s3 }
0x2b03   :  { %1996 = vrot.lane.b32.xlu0 %v3136_v18, %s2788_s3  ;;  %v2537_v18 = vpack.c.bf16 %v1984_v51, %v1983_v50 }
0x2b05   :  { %2538 = vmatprep.subr.bf16.mxu0 %v2537_v18 }
0x2b06   :  { %2540 = vmatpush3.bf16.msra.mxu0 %v2537_v18 }
0x2b07   :  { %2542 = vmatprep.subr.bf16.mxu0 %v2541_v53 }
0x2b0a   :  { %2544 = vmatpush3.bf16.msra.mxu0 %v2541_v53 }
0x2b71   :  { %v1968_v12 = vpop.permute.xlu0 %1967 }
0x2b72   :  { %v1970_v48 = vadd.f32 %v1968_v12, %v1960_v47 }
0x2b74   :  { %2682 = vtanh.f32 %v1970_v48 }
0x2b75   :  { %v1997_v49 = vpop.permute.xlu0 %1996 }
0x2b76   :  { %2426 = vmatprep.mubr.msk.f32.mxu0 %vm186_vm2, %v1997_v49 }
0x2b7e   :  { %v2683_v54 = vpop.eup %2682 }
0x2b7f   :  { %1973 = vrot.lane.b32.xlu1 %v2683_v54, %s2787_s21 }
0x2bf1   :  { %v1974_v55 = vpop.permute.xlu1 %1973 }
0x2bf2   :  { %v1976_v56 = vmul.f32 %v2681_v43, %v1974_v55 }
0x2bf4   :  { %v1982_v57 = vsel %vm1033_vm5, %v1981_v32, %v1976_v56 }
0x2bf5   :  { %1998 = vrot.lane.b32.xlu1 %v1982_v57, %s2788_s3 }
0x2c67   :  { %v1999_v58 = vpop.permute.xlu1 %1998 }
0x2c68   :  { %2427 = vmatmul.mubr.msk.f32.vlgmr.msra.gmra.mrb[18].mxu0 %vm186_vm2, %v1999_v58 }
0x2d3b   :  { %v2428_v60 = vpop.f32.mrb[18].mxu0 }
0x2d3c   :  { %v2076_v62 = vadd.f32 %v2428_v60, %v2125_v59  ;;  %v2070_v61 = vpop.f32.mrb[19].mxu0 }
0x2d3d   :  { %v2071_v2 = vadd.f32 %v2125_v59, %v2070_v61 }
0x2d3e   :  { %2081 = vst.msk [vmem:[%s3211_s9 + $0x8] sm:$0xff] %vm2079_vm6, %v2076_v62 }
0x2d3f   :  { %2080 = vst.msk [vmem:[%s3211_s9] sm:$0xff] %vm2079_vm6, %v2071_v2 }
0x2d40   :  { %2086 = vsyncpa [#allocation4], 1 }
0x2d41   :  { %2087 = vsyncpa [#allocation6], 1 }
0x2d42   :  { %2088 = vsyncpa [#allocation9], 1 }

</bundles_post_ra>
